<compile_context>
chip_gen: v5e
topology: v5e:2x2
jax: 0.10.0
libtpu: 0.0.40
codegen_flags: <defaults>
</compile_context>

<pallas_src>
import jax
import jax.numpy as jnp
from jax import lax
from jax.experimental import pallas as pl
from jax.experimental.pallas import tpu as pltpu
import numpy as np


# --------------------------------- kernel ---------------------------------
def _gru_fc_kernel(x_ref,                          # (TC, BT, Dp)  bf16, time-major chunk
                   wih_f_ref, whh_f_ref,           # (Dp, 3Hp), (Hp, 3Hp)  bf16
                   bi_f_ref, bhn_f_ref,            # (1, 3Hp), (1, Hp)     f32
                   wih_b_ref, bi_b_ref, bhn_b_ref,  # backward dir (no whh_b: h0 == 0)
                   fcw_ref, fcb_ref,               # (2Hp, O), (1, O)      f32
                   out_ref,                        # (BT, O)               f32
                   h_ref):                         # scratch (BT, Hp)      f32
    TC, BT, Dp = x_ref.shape
    Hp = whh_f_ref.shape[0]
    c = pl.program_id(1)

    @pl.when(c == 0)
    def _():
        h_ref[...] = jnp.zeros_like(h_ref)

    # ---- hoisted input projection for the whole chunk: (TC*BT, Dp) @ (Dp, 3Hp) ----
    x2d = x_ref[...].reshape(TC * BT, Dp)
    gi = jnp.dot(x2d, wih_f_ref[...],
                 preferred_element_type=jnp.float32) + bi_f_ref[...]      # (TC*BT, 3Hp)

    whh = whh_f_ref[...]
    bhn = jnp.broadcast_to(bhn_f_ref[...], (BT, Hp))    # broadcast once, not per step

    # ---- serial forward recurrence over the chunk (fully unrolled) ----
    h = h_ref[...]
    for t in range(TC):
        gi_t = gi[t * BT:(t + 1) * BT, :]
        gh = jnp.dot(h.astype(jnp.bfloat16), whh,
                     preferred_element_type=jnp.float32)                  # (BT, 3Hp)
        r = jax.nn.sigmoid(gi_t[:, :Hp] + gh[:, :Hp])
        z = jax.nn.sigmoid(gi_t[:, Hp:2 * Hp] + gh[:, Hp:2 * Hp])
        n = jnp.tanh(gi_t[:, 2 * Hp:] + r * (gh[:, 2 * Hp:] + bhn))
        h = (1.0 - z) * n + z * h
    h_ref[...] = h

    # ---- last chunk: single backward step (from h0 = 0) + FC head ----
    @pl.when(c == pl.num_programs(1) - 1)
    def _():
        xb = x_ref[TC - 1]                                                # (BT, Dp)
        gib = jnp.dot(xb, wih_b_ref[...],
                      preferred_element_type=jnp.float32) + bi_b_ref[...]
        rb = jax.nn.sigmoid(gib[:, :Hp])
        zb = jax.nn.sigmoid(gib[:, Hp:2 * Hp])
        nb = jnp.tanh(gib[:, 2 * Hp:] + rb * bhn_b_ref[...])
        h_bwd = (1.0 - zb) * nb                                           # + zb * 0

        fcw = fcw_ref[...]
        out = (jnp.dot(h, fcw[:Hp, :], preferred_element_type=jnp.float32)
               + jnp.dot(h_bwd, fcw[Hp:, :], preferred_element_type=jnp.float32)
               + fcb_ref[...])
        out_ref[...] = out.astype(out_ref.dtype)


# --------------------------------- wrapper ---------------------------------
def _round_up(v, m):
    return (v + m - 1) // m * m


def _pick_time_chunk(T, target=32):
    for tc in range(min(T, target), 0, -1):
        if T % tc == 0:
            return tc
    return 1


def _pack_params(params, D, H, Dp, Hp, O):
    """PyTorch-layout params -> padded, gate-fused kernel params (lane order [r|z|n])."""
    (wih_f, whh_f, bih_f, bhh_f,
     wih_b, whh_b, bih_b, bhh_b, fcw, fcb) = params
    del whh_b  # h0 == 0 => backward hidden matmul at t = T-1 is exactly zero.

    def fuse_w(w, rows, rows_p):                 # (3H, rows) -> (rows_p, 3Hp), bf16
        w3 = jnp.transpose(w.reshape(3, H, rows), (0, 2, 1))              # (3, rows, H)
        wp = jnp.zeros((3, rows_p, Hp), jnp.float32).at[:, :rows, :H].set(w3)
        return jnp.transpose(wp, (1, 0, 2)).reshape(rows_p, 3 * Hp).astype(jnp.bfloat16)

    def fuse_b(br, bz, bn):                      # three (H,) -> (1, 3Hp), f32
        bp = jnp.zeros((3, Hp), jnp.float32)
        bp = bp.at[0, :H].set(br).at[1, :H].set(bz).at[2, :H].set(bn)
        return bp.reshape(1, 3 * Hp)

    def pad_h(b):                                # (H,) -> (1, Hp)
        return jnp.zeros((1, Hp), jnp.float32).at[0, :H].set(b)

    bif, bhf = bih_f.reshape(3, H), bhh_f.reshape(3, H)
    bib, bhb = bih_b.reshape(3, H), bhh_b.reshape(3, H)

    wih_f_k = fuse_w(wih_f, D, Dp)
    whh_f_k = fuse_w(whh_f, H, Hp)
    bi_f_k = fuse_b(bif[0] + bhf[0], bif[1] + bhf[1], bif[2])   # bhh_n stays inside r*(...)
    bhn_f_k = pad_h(bhf[2])

    wih_b_k = fuse_w(wih_b, D, Dp)
    bi_b_k = fuse_b(bib[0] + bhb[0], bib[1] + bhb[1], bib[2])
    bhn_b_k = pad_h(bhb[2])

    fcw_k = jnp.zeros((2 * Hp, O), jnp.float32)
    fcw_k = fcw_k.at[:H, :].set(fcw[:, :H].T).at[Hp:Hp + H, :].set(fcw[:, H:].T)
    fcb_k = fcb.reshape(1, O).astype(jnp.float32)

    return (wih_f_k, whh_f_k, bi_f_k, bhn_f_k,
            wih_b_k, bi_b_k, bhn_b_k, fcw_k, fcb_k)


@jax.jit
def gru_model_forward(x, params):
    """x: (B, T, D) batch-first float32, params in PyTorch layout. Returns (B, O) float32."""
    B, T, D = x.shape
    H = params[1].shape[1]       # whh_f: (3H, H)
    O = params[8].shape[0]       # fcw:   (O, 2H)

    Hp = _round_up(H, 128)       # lane-dense hidden width
    Dp = _round_up(D, 8)         # sublane-aligned contraction dim
    Bp = _round_up(B, 8)         # sublane-dense batch
    if Bp > 128:
        B_TILE = 128
        Bp = _round_up(Bp, 128)
    else:
        B_TILE = Bp
    TC = _pick_time_chunk(T)

    # Pad + cast + go time-major; fuses into one pass over x under jit.
    xp = jnp.pad(x.astype(jnp.bfloat16), ((0, Bp - B), (0, 0), (0, Dp - D)))
    xp = jnp.transpose(xp, (1, 0, 2))                                     # (T, Bp, Dp)

    kp = _pack_params(params, D, H, Dp, Hp, O)

    def wspec(shape):            # resident (never re-fetched) weight/bias blocks
        return pl.BlockSpec(shape, lambda b, c: (0, 0))

    out_p = pl.pallas_call(
        _gru_fc_kernel,
        out_shape=jax.ShapeDtypeStruct((Bp, O), jnp.float32),
        grid=(Bp // B_TILE, T // TC),
        in_specs=[
            pl.BlockSpec((TC, B_TILE, Dp), lambda b, c: (c, b, 0)),       # streamed x chunk
            wspec((Dp, 3 * Hp)), wspec((Hp, 3 * Hp)),
            wspec((1, 3 * Hp)), wspec((1, Hp)),
            wspec((Dp, 3 * Hp)), wspec((1, 3 * Hp)), wspec((1, Hp)),
            wspec((2 * Hp, O)), wspec((1, O)),
        ],
        out_specs=pl.BlockSpec((B_TILE, O), lambda b, c: (b, 0)),
        scratch_shapes=[pltpu.VMEM((B_TILE, Hp), jnp.float32)],           # carried h
        compiler_params=pltpu.CompilerParams(
            dimension_semantics=("parallel", "arbitrary")),
    )(xp, *kp)
    return out_p[:B]


# --------------------- pure-JAX reference (f32, full bidirectional GRU) ---------------------
def gru_model_reference(x, params):
    (wih_f, whh_f, bih_f, bhh_f,
     wih_b, whh_b, bih_b, bhh_b, fcw, fcb) = params
    B, T, D = x.shape
    H = whh_f.shape[1]

    def cell(h, xt, wih, whh, bih, bhh):
        gi = xt @ wih.T + bih
        gh = h @ whh.T + bhh
        i_r, i_z, i_n = jnp.split(gi, 3, axis=-1)
        h_r, h_z, h_n = jnp.split(gh, 3, axis=-1)
        r = jax.nn.sigmoid(i_r + h_r)
        z = jax.nn.sigmoid(i_z + h_z)
        n = jnp.tanh(i_n + r * h_n)
        return (1.0 - z) * n + z * h

    xs = jnp.transpose(x, (1, 0, 2))
    h0 = jnp.zeros((B, H), jnp.float32)

    def fstep(h, xt):
        hn = cell(h, xt, wih_f, whh_f, bih_f, bhh_f)
        return hn, hn

    def bstep(h, xt):
        hn = cell(h, xt, wih_b, whh_b, bih_b, bhh_b)
        return hn, hn

    _, hf = lax.scan(fstep, h0, xs)
    _, hb_rev = lax.scan(bstep, h0, xs[::-1])
    last = jnp.concatenate([hf[-1], hb_rev[::-1][-1]], axis=-1)           # y[:, -1, :]
    return last @ fcw.T + fcb


def init_params(key, input_dim, hidden_dim, output_dim=1):
    """PyTorch-layout params, uniform(-1/sqrt(H), 1/sqrt(H)), gate order [r, z, n]."""
    k = 1.0 / np.sqrt(hidden_dim)
    keys = jax.random.split(key, 10)
    u = lambda kk, shape: jax.random.uniform(kk, shape, jnp.float32, minval=-k, maxval=k)
    wih_f = u(keys[0], (3 * hidden_dim, input_dim))
    whh_f = u(keys[1], (3 * hidden_dim, hidden_dim))
    bih_f = u(keys[2], (3 * hidden_dim,))
    bhh_f = u(keys[3], (3 * hidden_dim,))
    wih_b = u(keys[4], (3 * hidden_dim, input_dim))
    whh_b = u(keys[5], (3 * hidden_dim, hidden_dim))
    bih_b = u(keys[6], (3 * hidden_dim,))
    bhh_b = u(keys[7], (3 * hidden_dim,))
    fcw = u(keys[8], (output_dim, 2 * hidden_dim))
    fcb = u(keys[9], (output_dim,))
    return (wih_f, whh_f, bih_f, bhh_f, wih_b, whh_b, bih_b, bhh_b, fcw, fcb)


if __name__ == "__main__":
    B, T, D, H, O = 2, 8, 16, 32, 1
    key = jax.random.PRNGKey(0)
    kx, kp = jax.random.split(key)
    x = jax.random.normal(kx, (B, T, D), jnp.float32)
    params = init_params(kp, D, H, O)

    out = jax.block_until_ready(gru_model_forward(x, params))
    ref = jax.block_until_ready(gru_model_reference(x, params))

    # Kernel uses bf16 weights/inputs with f32 accumulation; compare to f32 reference.
    np.testing.assert_allclose(np.asarray(out), np.asarray(ref), rtol=2e-2, atol=2e-2)
    assert out.shape == (B, O) and out.dtype == jnp.float32
    print("KERNEL_OK")
</pallas_src>

<mosaic_0001>
module attributes {stable_mosaic.version = 11 : i64} {
  func.func @_gru_fc_kernel(%arg0: i32, %arg1: i32, %arg2: memref<8x8x16xbf16, #tpu.memory_space<vmem>>, %arg3: memref<16x384xbf16, #tpu.memory_space<vmem>>, %arg4: memref<128x384xbf16, #tpu.memory_space<vmem>>, %arg5: memref<1x384xf32, #tpu.memory_space<vmem>>, %arg6: memref<1x128xf32, #tpu.memory_space<vmem>>, %arg7: memref<16x384xbf16, #tpu.memory_space<vmem>>, %arg8: memref<1x384xf32, #tpu.memory_space<vmem>>, %arg9: memref<1x128xf32, #tpu.memory_space<vmem>>, %arg10: memref<256x1xf32, #tpu.memory_space<vmem>>, %arg11: memref<1x1xf32, #tpu.memory_space<vmem>>, %arg12: memref<8x1xf32, #tpu.memory_space<vmem>>, %arg13: memref<8x128xf32, #tpu.memory_space<vmem>>) attributes {dimension_semantics = [#tpu.dimension_semantics<parallel>, #tpu.dimension_semantics<arbitrary>], iteration_bounds = array<i64: 1, 1>, scalar_prefetch = 0 : i64, scratch_operands = 1 : i64, tpu.core_type = #tpu.core_type<tc>, window_params = [{transform_indices = @transform_0, window_bounds = array<i64: 8, 8, 16>}, {pipeline_mode = #tpu.pipeline_mode<synchronous>, transform_indices = @transform_1, window_bounds = array<i64: 16, 384>}, {pipeline_mode = #tpu.pipeline_mode<synchronous>, transform_indices = @transform_2, window_bounds = array<i64: 128, 384>}, {pipeline_mode = #tpu.pipeline_mode<synchronous>, transform_indices = @transform_3, window_bounds = array<i64: 1, 384>}, {pipeline_mode = #tpu.pipeline_mode<synchronous>, transform_indices = @transform_4, window_bounds = array<i64: 1, 128>}, {pipeline_mode = #tpu.pipeline_mode<synchronous>, transform_indices = @transform_5, window_bounds = array<i64: 16, 384>}, {pipeline_mode = #tpu.pipeline_mode<synchronous>, transform_indices = @transform_6, window_bounds = array<i64: 1, 384>}, {pipeline_mode = #tpu.pipeline_mode<synchronous>, transform_indices = @transform_7, window_bounds = array<i64: 1, 128>}, {pipeline_mode = #tpu.pipeline_mode<synchronous>, transform_indices = @transform_8, window_bounds = array<i64: 256, 1>}, {pipeline_mode = #tpu.pipeline_mode<synchronous>, transform_indices = @transform_9, window_bounds = array<i64: 1, 1>}, {transform_indices = @transform_10, window_bounds = array<i64: 8, 1>}]} {
    %c0_i32 = arith.constant 0 : i32
    %0 = arith.cmpi eq, %arg1, %c0_i32 : i32
    %1 = arith.extui %0 : i1 to i32
    %c0_i32_0 = arith.constant 0 : i32
    %2 = arith.cmpi ne, %1, %c0_i32_0 : i32
    scf.if %2 {
      %cst_49 = arith.constant 0.000000e+00 : f32
      %259 = vector.broadcast %cst_49 : f32 to vector<8x128xf32>
      %c0_50 = arith.constant 0 : index
      %c0_51 = arith.constant 0 : index
      %260 = vector.load %arg13[%c0_50, %c0_51] : memref<8x128xf32, #tpu.memory_space<vmem>>, vector<8x128xf32>
      tpu.vector_store %arg13[%c0_50, %c0_51], %259 {strides = array<i32>} : memref<8x128xf32, #tpu.memory_space<vmem>>, vector<8x128xf32>,
    } else {
    }
    %c0 = arith.constant 0 : index
    %c0_1 = arith.constant 0 : index
    %c0_2 = arith.constant 0 : index
    %3 = vector.load %arg2[%c0, %c0_1, %c0_2] : memref<8x8x16xbf16, #tpu.memory_space<vmem>>, vector<8x8x16xbf16>
    %4 = vector.shape_cast %3 : vector<8x8x16xbf16> to vector<64x16xbf16>
    %c0_3 = arith.constant 0 : index
    %c0_4 = arith.constant 0 : index
    %5 = vector.load %arg3[%c0_3, %c0_4] : memref<16x384xbf16, #tpu.memory_space<vmem>>, vector<16x384xbf16>
    %cst = arith.constant dense<0.000000e+00> : vector<64x384xf32>
    %6 = tpu.matmul %4, %5, %cst {dimension_numbers = #tpu.dot_dimension_numbers<[1], [0], [0], [1], [0, 0, 1, 1], [], []>} : vector<64x16xbf16>, vector<16x384xbf16>, vector<64x384xf32> -> vector<64x384xf32>
    %c0_5 = arith.constant 0 : index
    %c0_6 = arith.constant 0 : index
    %7 = vector.load %arg5[%c0_5, %c0_6] : memref<1x384xf32, #tpu.memory_space<vmem>>, vector<1x384xf32>
    %8 = vector.broadcast %7 : vector<1x384xf32> to vector<64x384xf32>
    %9 = arith.addf %6, %8 : vector<64x384xf32>
    %c0_7 = arith.constant 0 : index
    %c0_8 = arith.constant 0 : index
    %10 = vector.load %arg4[%c0_7, %c0_8] : memref<128x384xbf16, #tpu.memory_space<vmem>>, vector<128x384xbf16>
    %c0_9 = arith.constant 0 : index
    %c0_10 = arith.constant 0 : index
    %11 = vector.load %arg6[%c0_9, %c0_10] : memref<1x128xf32, #tpu.memory_space<vmem>>, vector<1x128xf32>
    %12 = vector.shape_cast %11 : vector<1x128xf32> to vector<1x128xf32>
    %13 = vector.broadcast %12 : vector<1x128xf32> to vector<8x128xf32>
    %c0_11 = arith.constant 0 : index
    %c0_12 = arith.constant 0 : index
    %14 = vector.load %arg13[%c0_11, %c0_12] : memref<8x128xf32, #tpu.memory_space<vmem>>, vector<8x128xf32>
    %15 = vector.extract_strided_slice %9 {offsets = [0, 0], sizes = [8, 384], strides = [1, 1]} : vector<64x384xf32> to vector<8x384xf32>
    %16 = arith.truncf %14 : vector<8x128xf32> to vector<8x128xbf16>
    %cst_13 = arith.constant dense<0.000000e+00> : vector<8x384xf32>
    %17 = tpu.matmul %16, %10, %cst_13 {dimension_numbers = #tpu.dot_dimension_numbers<[1], [0], [0], [1], [0, 0, 1, 1], [], []>} : vector<8x128xbf16>, vector<128x384xbf16>, vector<8x384xf32> -> vector<8x384xf32>
    %18 = vector.extract_strided_slice %15 {offsets = [0, 0], sizes = [8, 128], strides = [1, 1]} : vector<8x384xf32> to vector<8x128xf32>
    %19 = vector.extract_strided_slice %17 {offsets = [0, 0], sizes = [8, 128], strides = [1, 1]} : vector<8x384xf32> to vector<8x128xf32>
    %20 = arith.addf %18, %19 : vector<8x128xf32>
    %21 = arith.negf %20 : vector<8x128xf32>
    %22 = math.exp %21 : vector<8x128xf32>
    %cst_14 = arith.constant 1.000000e+00 : f32
    %23 = vector.broadcast %cst_14 : f32 to vector<8x128xf32>
    %24 = arith.addf %23, %22 : vector<8x128xf32>
    %25 = arith.divf %23, %24 : vector<8x128xf32>
    %26 = vector.extract_strided_slice %15 {offsets = [0, 128], sizes = [8, 128], strides = [1, 1]} : vector<8x384xf32> to vector<8x128xf32>
    %27 = vector.extract_strided_slice %17 {offsets = [0, 128], sizes = [8, 128], strides = [1, 1]} : vector<8x384xf32> to vector<8x128xf32>
    %28 = arith.addf %26, %27 : vector<8x128xf32>
    %29 = arith.negf %28 : vector<8x128xf32>
    %30 = math.exp %29 : vector<8x128xf32>
    %cst_15 = arith.constant 1.000000e+00 : f32
    %31 = vector.broadcast %cst_15 : f32 to vector<8x128xf32>
    %32 = arith.addf %31, %30 : vector<8x128xf32>
    %33 = arith.divf %31, %32 : vector<8x128xf32>
    %34 = vector.extract_strided_slice %15 {offsets = [0, 256], sizes = [8, 128], strides = [1, 1]} : vector<8x384xf32> to vector<8x128xf32>
    %35 = vector.extract_strided_slice %17 {offsets = [0, 256], sizes = [8, 128], strides = [1, 1]} : vector<8x384xf32> to vector<8x128xf32>
    %36 = arith.addf %35, %13 : vector<8x128xf32>
    %37 = arith.mulf %25, %36 : vector<8x128xf32>
    %38 = arith.addf %34, %37 : vector<8x128xf32>
    %39 = math.tanh %38 : vector<8x128xf32>
    %cst_16 = arith.constant 1.000000e+00 : f32
    %40 = vector.broadcast %cst_16 : f32 to vector<8x128xf32>
    %41 = arith.subf %40, %33 : vector<8x128xf32>
    %42 = arith.mulf %41, %39 : vector<8x128xf32>
    %43 = arith.mulf %33, %14 : vector<8x128xf32>
    %44 = arith.addf %42, %43 : vector<8x128xf32>
    %45 = vector.extract_strided_slice %9 {offsets = [8, 0], sizes = [8, 384], strides = [1, 1]} : vector<64x384xf32> to vector<8x384xf32>
    %46 = arith.truncf %44 : vector<8x128xf32> to vector<8x128xbf16>
    %cst_17 = arith.constant dense<0.000000e+00> : vector<8x384xf32>
    %47 = tpu.matmul %46, %10, %cst_17 {dimension_numbers = #tpu.dot_dimension_numbers<[1], [0], [0], [1], [0, 0, 1, 1], [], []>} : vector<8x128xbf16>, vector<128x384xbf16>, vector<8x384xf32> -> vector<8x384xf32>
    %48 = vector.extract_strided_slice %45 {offsets = [0, 0], sizes = [8, 128], strides = [1, 1]} : vector<8x384xf32> to vector<8x128xf32>
    %49 = vector.extract_strided_slice %47 {offsets = [0, 0], sizes = [8, 128], strides = [1, 1]} : vector<8x384xf32> to vector<8x128xf32>
    %50 = arith.addf %48, %49 : vector<8x128xf32>
    %51 = arith.negf %50 : vector<8x128xf32>
    %52 = math.exp %51 : vector<8x128xf32>
    %cst_18 = arith.constant 1.000000e+00 : f32
    %53 = vector.broadcast %cst_18 : f32 to vector<8x128xf32>
    %54 = arith.addf %53, %52 : vector<8x128xf32>
    %55 = arith.divf %53, %54 : vector<8x128xf32>
    %56 = vector.extract_strided_slice %45 {offsets = [0, 128], sizes = [8, 128], strides = [1, 1]} : vector<8x384xf32> to vector<8x128xf32>
    %57 = vector.extract_strided_slice %47 {offsets = [0, 128], sizes = [8, 128], strides = [1, 1]} : vector<8x384xf32> to vector<8x128xf32>
    %58 = arith.addf %56, %57 : vector<8x128xf32>
    %59 = arith.negf %58 : vector<8x128xf32>
    %60 = math.exp %59 : vector<8x128xf32>
    %cst_19 = arith.constant 1.000000e+00 : f32
    %61 = vector.broadcast %cst_19 : f32 to vector<8x128xf32>
    %62 = arith.addf %61, %60 : vector<8x128xf32>
    %63 = arith.divf %61, %62 : vector<8x128xf32>
    %64 = vector.extract_strided_slice %45 {offsets = [0, 256], sizes = [8, 128], strides = [1, 1]} : vector<8x384xf32> to vector<8x128xf32>
    %65 = vector.extract_strided_slice %47 {offsets = [0, 256], sizes = [8, 128], strides = [1, 1]} : vector<8x384xf32> to vector<8x128xf32>
    %66 = arith.addf %65, %13 : vector<8x128xf32>
    %67 = arith.mulf %55, %66 : vector<8x128xf32>
    %68 = arith.addf %64, %67 : vector<8x128xf32>
    %69 = math.tanh %68 : vector<8x128xf32>
    %cst_20 = arith.constant 1.000000e+00 : f32
    %70 = vector.broadcast %cst_20 : f32 to vector<8x128xf32>
    %71 = arith.subf %70, %63 : vector<8x128xf32>
    %72 = arith.mulf %71, %69 : vector<8x128xf32>
    %73 = arith.mulf %63, %44 : vector<8x128xf32>
    %74 = arith.addf %72, %73 : vector<8x128xf32>
    %75 = vector.extract_strided_slice %9 {offsets = [16, 0], sizes = [8, 384], strides = [1, 1]} : vector<64x384xf32> to vector<8x384xf32>
    %76 = arith.truncf %74 : vector<8x128xf32> to vector<8x128xbf16>
    %cst_21 = arith.constant dense<0.000000e+00> : vector<8x384xf32>
    %77 = tpu.matmul %76, %10, %cst_21 {dimension_numbers = #tpu.dot_dimension_numbers<[1], [0], [0], [1], [0, 0, 1, 1], [], []>} : vector<8x128xbf16>, vector<128x384xbf16>, vector<8x384xf32> -> vector<8x384xf32>
    %78 = vector.extract_strided_slice %75 {offsets = [0, 0], sizes = [8, 128], strides = [1, 1]} : vector<8x384xf32> to vector<8x128xf32>
    %79 = vector.extract_strided_slice %77 {offsets = [0, 0], sizes = [8, 128], strides = [1, 1]} : vector<8x384xf32> to vector<8x128xf32>
    %80 = arith.addf %78, %79 : vector<8x128xf32>
    %81 = arith.negf %80 : vector<8x128xf32>
    %82 = math.exp %81 : vector<8x128xf32>
    %cst_22 = arith.constant 1.000000e+00 : f32
    %83 = vector.broadcast %cst_22 : f32 to vector<8x128xf32>
    %84 = arith.addf %83, %82 : vector<8x128xf32>
    %85 = arith.divf %83, %84 : vector<8x128xf32>
    %86 = vector.extract_strided_slice %75 {offsets = [0, 128], sizes = [8, 128], strides = [1, 1]} : vector<8x384xf32> to vector<8x128xf32>
    %87 = vector.extract_strided_slice %77 {offsets = [0, 128], sizes = [8, 128], strides = [1, 1]} : vector<8x384xf32> to vector<8x128xf32>
    %88 = arith.addf %86, %87 : vector<8x128xf32>
    %89 = arith.negf %88 : vector<8x128xf32>
    %90 = math.exp %89 : vector<8x128xf32>
    %cst_23 = arith.constant 1.000000e+00 : f32
    %91 = vector.broadcast %cst_23 : f32 to vector<8x128xf32>
    %92 = arith.addf %91, %90 : vector<8x128xf32>
    %93 = arith.divf %91, %92 : vector<8x128xf32>
    %94 = vector.extract_strided_slice %75 {offsets = [0, 256], sizes = [8, 128], strides = [1, 1]} : vector<8x384xf32> to vector<8x128xf32>
    %95 = vector.extract_strided_slice %77 {offsets = [0, 256], sizes = [8, 128], strides = [1, 1]} : vector<8x384xf32> to vector<8x128xf32>
    %96 = arith.addf %95, %13 : vector<8x128xf32>
    %97 = arith.mulf %85, %96 : vector<8x128xf32>
    %98 = arith.addf %94, %97 : vector<8x128xf32>
    %99 = math.tanh %98 : vector<8x128xf32>
    %cst_24 = arith.constant 1.000000e+00 : f32
    %100 = vector.broadcast %cst_24 : f32 to vector<8x128xf32>
    %101 = arith.subf %100, %93 : vector<8x128xf32>
    %102 = arith.mulf %101, %99 : vector<8x128xf32>
    %103 = arith.mulf %93, %74 : vector<8x128xf32>
    %104 = arith.addf %102, %103 : vector<8x128xf32>
    %105 = vector.extract_strided_slice %9 {offsets = [24, 0], sizes = [8, 384], strides = [1, 1]} : vector<64x384xf32> to vector<8x384xf32>
    %106 = arith.truncf %104 : vector<8x128xf32> to vector<8x128xbf16>
    %cst_25 = arith.constant dense<0.000000e+00> : vector<8x384xf32>
    %107 = tpu.matmul %106, %10, %cst_25 {dimension_numbers = #tpu.dot_dimension_numbers<[1], [0], [0], [1], [0, 0, 1, 1], [], []>} : vector<8x128xbf16>, vector<128x384xbf16>, vector<8x384xf32> -> vector<8x384xf32>
    %108 = vector.extract_strided_slice %105 {offsets = [0, 0], sizes = [8, 128], strides = [1, 1]} : vector<8x384xf32> to vector<8x128xf32>
    %109 = vector.extract_strided_slice %107 {offsets = [0, 0], sizes = [8, 128], strides = [1, 1]} : vector<8x384xf32> to vector<8x128xf32>
    %110 = arith.addf %108, %109 : vector<8x128xf32>
    %111 = arith.negf %110 : vector<8x128xf32>
    %112 = math.exp %111 : vector<8x128xf32>
    %cst_26 = arith.constant 1.000000e+00 : f32
    %113 = vector.broadcast %cst_26 : f32 to vector<8x128xf32>
    %114 = arith.addf %113, %112 : vector<8x128xf32>
    %115 = arith.divf %113, %114 : vector<8x128xf32>
    %116 = vector.extract_strided_slice %105 {offsets = [0, 128], sizes = [8, 128], strides = [1, 1]} : vector<8x384xf32> to vector<8x128xf32>
    %117 = vector.extract_strided_slice %107 {offsets = [0, 128], sizes = [8, 128], strides = [1, 1]} : vector<8x384xf32> to vector<8x128xf32>
    %118 = arith.addf %116, %117 : vector<8x128xf32>
    %119 = arith.negf %118 : vector<8x128xf32>
    %120 = math.exp %119 : vector<8x128xf32>
    %cst_27 = arith.constant 1.000000e+00 : f32
    %121 = vector.broadcast %cst_27 : f32 to vector<8x128xf32>
    %122 = arith.addf %121, %120 : vector<8x128xf32>
    %123 = arith.divf %121, %122 : vector<8x128xf32>
    %124 = vector.extract_strided_slice %105 {offsets = [0, 256], sizes = [8, 128], strides = [1, 1]} : vector<8x384xf32> to vector<8x128xf32>
    %125 = vector.extract_strided_slice %107 {offsets = [0, 256], sizes = [8, 128], strides = [1, 1]} : vector<8x384xf32> to vector<8x128xf32>
    %126 = arith.addf %125, %13 : vector<8x128xf32>
    %127 = arith.mulf %115, %126 : vector<8x128xf32>
    %128 = arith.addf %124, %127 : vector<8x128xf32>
    %129 = math.tanh %128 : vector<8x128xf32>
    %cst_28 = arith.constant 1.000000e+00 : f32
    %130 = vector.broadcast %cst_28 : f32 to vector<8x128xf32>
    %131 = arith.subf %130, %123 : vector<8x128xf32>
    %132 = arith.mulf %131, %129 : vector<8x128xf32>
    %133 = arith.mulf %123, %104 : vector<8x128xf32>
    %134 = arith.addf %132, %133 : vector<8x128xf32>
    %135 = vector.extract_strided_slice %9 {offsets = [32, 0], sizes = [8, 384], strides = [1, 1]} : vector<64x384xf32> to vector<8x384xf32>
    %136 = arith.truncf %134 : vector<8x128xf32> to vector<8x128xbf16>
    %cst_29 = arith.constant dense<0.000000e+00> : vector<8x384xf32>
    %137 = tpu.matmul %136, %10, %cst_29 {dimension_numbers = #tpu.dot_dimension_numbers<[1], [0], [0], [1], [0, 0, 1, 1], [], []>} : vector<8x128xbf16>, vector<128x384xbf16>, vector<8x384xf32> -> vector<8x384xf32>
    %138 = vector.extract_strided_slice %135 {offsets = [0, 0], sizes = [8, 128], strides = [1, 1]} : vector<8x384xf32> to vector<8x128xf32>
    %139 = vector.extract_strided_slice %137 {offsets = [0, 0], sizes = [8, 128], strides = [1, 1]} : vector<8x384xf32> to vector<8x128xf32>
    %140 = arith.addf %138, %139 : vector<8x128xf32>
    %141 = arith.negf %140 : vector<8x128xf32>
    %142 = math.exp %141 : vector<8x128xf32>
    %cst_30 = arith.constant 1.000000e+00 : f32
    %143 = vector.broadcast %cst_30 : f32 to vector<8x128xf32>
    %144 = arith.addf %143, %142 : vector<8x128xf32>
    %145 = arith.divf %143, %144 : vector<8x128xf32>
    %146 = vector.extract_strided_slice %135 {offsets = [0, 128], sizes = [8, 128], strides = [1, 1]} : vector<8x384xf32> to vector<8x128xf32>
    %147 = vector.extract_strided_slice %137 {offsets = [0, 128], sizes = [8, 128], strides = [1, 1]} : vector<8x384xf32> to vector<8x128xf32>
    %148 = arith.addf %146, %147 : vector<8x128xf32>
    %149 = arith.negf %148 : vector<8x128xf32>
    %150 = math.exp %149 : vector<8x128xf32>
    %cst_31 = arith.constant 1.000000e+00 : f32
    %151 = vector.broadcast %cst_31 : f32 to vector<8x128xf32>
    %152 = arith.addf %151, %150 : vector<8x128xf32>
    %153 = arith.divf %151, %152 : vector<8x128xf32>
    %154 = vector.extract_strided_slice %135 {offsets = [0, 256], sizes = [8, 128], strides = [1, 1]} : vector<8x384xf32> to vector<8x128xf32>
    %155 = vector.extract_strided_slice %137 {offsets = [0, 256], sizes = [8, 128], strides = [1, 1]} : vector<8x384xf32> to vector<8x128xf32>
    %156 = arith.addf %155, %13 : vector<8x128xf32>
    %157 = arith.mulf %145, %156 : vector<8x128xf32>
    %158 = arith.addf %154, %157 : vector<8x128xf32>
    %159 = math.tanh %158 : vector<8x128xf32>
    %cst_32 = arith.constant 1.000000e+00 : f32
    %160 = vector.broadcast %cst_32 : f32 to vector<8x128xf32>
    %161 = arith.subf %160, %153 : vector<8x128xf32>
    %162 = arith.mulf %161, %159 : vector<8x128xf32>
    %163 = arith.mulf %153, %134 : vector<8x128xf32>
    %164 = arith.addf %162, %163 : vector<8x128xf32>
    %165 = vector.extract_strided_slice %9 {offsets = [40, 0], sizes = [8, 384], strides = [1, 1]} : vector<64x384xf32> to vector<8x384xf32>
    %166 = arith.truncf %164 : vector<8x128xf32> to vector<8x128xbf16>
    %cst_33 = arith.constant dense<0.000000e+00> : vector<8x384xf32>
    %167 = tpu.matmul %166, %10, %cst_33 {dimension_numbers = #tpu.dot_dimension_numbers<[1], [0], [0], [1], [0, 0, 1, 1], [], []>} : vector<8x128xbf16>, vector<128x384xbf16>, vector<8x384xf32> -> vector<8x384xf32>
    %168 = vector.extract_strided_slice %165 {offsets = [0, 0], sizes = [8, 128], strides = [1, 1]} : vector<8x384xf32> to vector<8x128xf32>
    %169 = vector.extract_strided_slice %167 {offsets = [0, 0], sizes = [8, 128], strides = [1, 1]} : vector<8x384xf32> to vector<8x128xf32>
    %170 = arith.addf %168, %169 : vector<8x128xf32>
    %171 = arith.negf %170 : vector<8x128xf32>
    %172 = math.exp %171 : vector<8x128xf32>
    %cst_34 = arith.constant 1.000000e+00 : f32
    %173 = vector.broadcast %cst_34 : f32 to vector<8x128xf32>
    %174 = arith.addf %173, %172 : vector<8x128xf32>
    %175 = arith.divf %173, %174 : vector<8x128xf32>
    %176 = vector.extract_strided_slice %165 {offsets = [0, 128], sizes = [8, 128], strides = [1, 1]} : vector<8x384xf32> to vector<8x128xf32>
    %177 = vector.extract_strided_slice %167 {offsets = [0, 128], sizes = [8, 128], strides = [1, 1]} : vector<8x384xf32> to vector<8x128xf32>
    %178 = arith.addf %176, %177 : vector<8x128xf32>
    %179 = arith.negf %178 : vector<8x128xf32>
    %180 = math.exp %179 : vector<8x128xf32>
    %cst_35 = arith.constant 1.000000e+00 : f32
    %181 = vector.broadcast %cst_35 : f32 to vector<8x128xf32>
    %182 = arith.addf %181, %180 : vector<8x128xf32>
    %183 = arith.divf %181, %182 : vector<8x128xf32>
    %184 = vector.extract_strided_slice %165 {offsets = [0, 256], sizes = [8, 128], strides = [1, 1]} : vector<8x384xf32> to vector<8x128xf32>
    %185 = vector.extract_strided_slice %167 {offsets = [0, 256], sizes = [8, 128], strides = [1, 1]} : vector<8x384xf32> to vector<8x128xf32>
    %186 = arith.addf %185, %13 : vector<8x128xf32>
    %187 = arith.mulf %175, %186 : vector<8x128xf32>
    %188 = arith.addf %184, %187 : vector<8x128xf32>
    %189 = math.tanh %188 : vector<8x128xf32>
    %cst_36 = arith.constant 1.000000e+00 : f32
    %190 = vector.broadcast %cst_36 : f32 to vector<8x128xf32>
    %191 = arith.subf %190, %183 : vector<8x128xf32>
    %192 = arith.mulf %191, %189 : vector<8x128xf32>
    %193 = arith.mulf %183, %164 : vector<8x128xf32>
    %194 = arith.addf %192, %193 : vector<8x128xf32>
    %195 = vector.extract_strided_slice %9 {offsets = [48, 0], sizes = [8, 384], strides = [1, 1]} : vector<64x384xf32> to vector<8x384xf32>
    %196 = arith.truncf %194 : vector<8x128xf32> to vector<8x128xbf16>
    %cst_37 = arith.constant dense<0.000000e+00> : vector<8x384xf32>
    %197 = tpu.matmul %196, %10, %cst_37 {dimension_numbers = #tpu.dot_dimension_numbers<[1], [0], [0], [1], [0, 0, 1, 1], [], []>} : vector<8x128xbf16>, vector<128x384xbf16>, vector<8x384xf32> -> vector<8x384xf32>
    %198 = vector.extract_strided_slice %195 {offsets = [0, 0], sizes = [8, 128], strides = [1, 1]} : vector<8x384xf32> to vector<8x128xf32>
    %199 = vector.extract_strided_slice %197 {offsets = [0, 0], sizes = [8, 128], strides = [1, 1]} : vector<8x384xf32> to vector<8x128xf32>
    %200 = arith.addf %198, %199 : vector<8x128xf32>
    %201 = arith.negf %200 : vector<8x128xf32>
    %202 = math.exp %201 : vector<8x128xf32>
    %cst_38 = arith.constant 1.000000e+00 : f32
    %203 = vector.broadcast %cst_38 : f32 to vector<8x128xf32>
    %204 = arith.addf %203, %202 : vector<8x128xf32>
    %205 = arith.divf %203, %204 : vector<8x128xf32>
    %206 = vector.extract_strided_slice %195 {offsets = [0, 128], sizes = [8, 128], strides = [1, 1]} : vector<8x384xf32> to vector<8x128xf32>
    %207 = vector.extract_strided_slice %197 {offsets = [0, 128], sizes = [8, 128], strides = [1, 1]} : vector<8x384xf32> to vector<8x128xf32>
    %208 = arith.addf %206, %207 : vector<8x128xf32>
    %209 = arith.negf %208 : vector<8x128xf32>
    %210 = math.exp %209 : vector<8x128xf32>
    %cst_39 = arith.constant 1.000000e+00 : f32
    %211 = vector.broadcast %cst_39 : f32 to vector<8x128xf32>
    %212 = arith.addf %211, %210 : vector<8x128xf32>
    %213 = arith.divf %211, %212 : vector<8x128xf32>
    %214 = vector.extract_strided_slice %195 {offsets = [0, 256], sizes = [8, 128], strides = [1, 1]} : vector<8x384xf32> to vector<8x128xf32>
    %215 = vector.extract_strided_slice %197 {offsets = [0, 256], sizes = [8, 128], strides = [1, 1]} : vector<8x384xf32> to vector<8x128xf32>
    %216 = arith.addf %215, %13 : vector<8x128xf32>
    %217 = arith.mulf %205, %216 : vector<8x128xf32>
    %218 = arith.addf %214, %217 : vector<8x128xf32>
    %219 = math.tanh %218 : vector<8x128xf32>
    %cst_40 = arith.constant 1.000000e+00 : f32
    %220 = vector.broadcast %cst_40 : f32 to vector<8x128xf32>
    %221 = arith.subf %220, %213 : vector<8x128xf32>
    %222 = arith.mulf %221, %219 : vector<8x128xf32>
    %223 = arith.mulf %213, %194 : vector<8x128xf32>
    %224 = arith.addf %222, %223 : vector<8x128xf32>
    %225 = vector.extract_strided_slice %9 {offsets = [56, 0], sizes = [8, 384], strides = [1, 1]} : vector<64x384xf32> to vector<8x384xf32>
    %226 = arith.truncf %224 : vector<8x128xf32> to vector<8x128xbf16>
    %cst_41 = arith.constant dense<0.000000e+00> : vector<8x384xf32>
    %227 = tpu.matmul %226, %10, %cst_41 {dimension_numbers = #tpu.dot_dimension_numbers<[1], [0], [0], [1], [0, 0, 1, 1], [], []>} : vector<8x128xbf16>, vector<128x384xbf16>, vector<8x384xf32> -> vector<8x384xf32>
    %228 = vector.extract_strided_slice %225 {offsets = [0, 0], sizes = [8, 128], strides = [1, 1]} : vector<8x384xf32> to vector<8x128xf32>
    %229 = vector.extract_strided_slice %227 {offsets = [0, 0], sizes = [8, 128], strides = [1, 1]} : vector<8x384xf32> to vector<8x128xf32>
    %230 = arith.addf %228, %229 : vector<8x128xf32>
    %231 = arith.negf %230 : vector<8x128xf32>
    %232 = math.exp %231 : vector<8x128xf32>
    %cst_42 = arith.constant 1.000000e+00 : f32
    %233 = vector.broadcast %cst_42 : f32 to vector<8x128xf32>
    %234 = arith.addf %233, %232 : vector<8x128xf32>
    %235 = arith.divf %233, %234 : vector<8x128xf32>
    %236 = vector.extract_strided_slice %225 {offsets = [0, 128], sizes = [8, 128], strides = [1, 1]} : vector<8x384xf32> to vector<8x128xf32>
    %237 = vector.extract_strided_slice %227 {offsets = [0, 128], sizes = [8, 128], strides = [1, 1]} : vector<8x384xf32> to vector<8x128xf32>
    %238 = arith.addf %236, %237 : vector<8x128xf32>
    %239 = arith.negf %238 : vector<8x128xf32>
    %240 = math.exp %239 : vector<8x128xf32>
    %cst_43 = arith.constant 1.000000e+00 : f32
    %241 = vector.broadcast %cst_43 : f32 to vector<8x128xf32>
    %242 = arith.addf %241, %240 : vector<8x128xf32>
    %243 = arith.divf %241, %242 : vector<8x128xf32>
    %244 = vector.extract_strided_slice %225 {offsets = [0, 256], sizes = [8, 128], strides = [1, 1]} : vector<8x384xf32> to vector<8x128xf32>
    %245 = vector.extract_strided_slice %227 {offsets = [0, 256], sizes = [8, 128], strides = [1, 1]} : vector<8x384xf32> to vector<8x128xf32>
    %246 = arith.addf %245, %13 : vector<8x128xf32>
    %247 = arith.mulf %235, %246 : vector<8x128xf32>
    %248 = arith.addf %244, %247 : vector<8x128xf32>
    %249 = math.tanh %248 : vector<8x128xf32>
    %cst_44 = arith.constant 1.000000e+00 : f32
    %250 = vector.broadcast %cst_44 : f32 to vector<8x128xf32>
    %251 = arith.subf %250, %243 : vector<8x128xf32>
    %252 = arith.mulf %251, %249 : vector<8x128xf32>
    %253 = arith.mulf %243, %224 : vector<8x128xf32>
    %254 = arith.addf %252, %253 : vector<8x128xf32>
    %c0_45 = arith.constant 0 : index
    %c0_46 = arith.constant 0 : index
    %255 = vector.load %arg13[%c0_45, %c0_46] : memref<8x128xf32, #tpu.memory_space<vmem>>, vector<8x128xf32>
    tpu.vector_store %arg13[%c0_45, %c0_46], %254 {strides = array<i32>} : memref<8x128xf32, #tpu.memory_space<vmem>>, vector<8x128xf32>,
    %c0_i32_47 = arith.constant 0 : i32
    %256 = arith.cmpi eq, %arg1, %c0_i32_47 : i32
    %257 = arith.extui %256 : i1 to i32
    %c0_i32_48 = arith.constant 0 : i32
    %258 = arith.cmpi ne, %257, %c0_i32_48 : i32
    scf.if %258 {
      %c7 = arith.constant 7 : index
      %c0_49 = arith.constant 0 : index
      %c0_50 = arith.constant 0 : index
      %259 = vector.load %arg2[%c7, %c0_49, %c0_50] : memref<8x8x16xbf16, #tpu.memory_space<vmem>>, vector<1x8x16xbf16>
      %260 = vector.shape_cast %259 : vector<1x8x16xbf16> to vector<8x16xbf16>
      %c0_51 = arith.constant 0 : index
      %c0_52 = arith.constant 0 : index
      %261 = vector.load %arg7[%c0_51, %c0_52] : memref<16x384xbf16, #tpu.memory_space<vmem>>, vector<16x384xbf16>
      %cst_53 = arith.constant dense<0.000000e+00> : vector<8x384xf32>
      %262 = tpu.matmul %260, %261, %cst_53 {dimension_numbers = #tpu.dot_dimension_numbers<[1], [0], [0], [1], [0, 0, 1, 1], [], []>} : vector<8x16xbf16>, vector<16x384xbf16>, vector<8x384xf32> -> vector<8x384xf32>
      %c0_54 = arith.constant 0 : index
      %c0_55 = arith.constant 0 : index
      %263 = vector.load %arg8[%c0_54, %c0_55] : memref<1x384xf32, #tpu.memory_space<vmem>>, vector<1x384xf32>
      %264 = vector.broadcast %263 : vector<1x384xf32> to vector<8x384xf32>
      %265 = arith.addf %262, %264 : vector<8x384xf32>
      %266 = vector.extract_strided_slice %265 {offsets = [0, 0], sizes = [8, 128], strides = [1, 1]} : vector<8x384xf32> to vector<8x128xf32>
      %267 = arith.negf %266 : vector<8x128xf32>
      %268 = math.exp %267 : vector<8x128xf32>
      %cst_56 = arith.constant 1.000000e+00 : f32
      %269 = vector.broadcast %cst_56 : f32 to vector<8x128xf32>
      %270 = arith.addf %269, %268 : vector<8x128xf32>
      %271 = arith.divf %269, %270 : vector<8x128xf32>
      %272 = vector.extract_strided_slice %265 {offsets = [0, 128], sizes = [8, 128], strides = [1, 1]} : vector<8x384xf32> to vector<8x128xf32>
      %273 = arith.negf %272 : vector<8x128xf32>
      %274 = math.exp %273 : vector<8x128xf32>
      %cst_57 = arith.constant 1.000000e+00 : f32
      %275 = vector.broadcast %cst_57 : f32 to vector<8x128xf32>
      %276 = arith.addf %275, %274 : vector<8x128xf32>
      %277 = arith.divf %275, %276 : vector<8x128xf32>
      %278 = vector.extract_strided_slice %265 {offsets = [0, 256], sizes = [8, 128], strides = [1, 1]} : vector<8x384xf32> to vector<8x128xf32>
      %c0_58 = arith.constant 0 : index
      %c0_59 = arith.constant 0 : index
      %279 = vector.load %arg9[%c0_58, %c0_59] : memref<1x128xf32, #tpu.memory_space<vmem>>, vector<1x128xf32>
      %280 = vector.broadcast %279 : vector<1x128xf32> to vector<8x128xf32>
      %281 = arith.mulf %271, %280 : vector<8x128xf32>
      %282 = arith.addf %278, %281 : vector<8x128xf32>
      %283 = math.tanh %282 : vector<8x128xf32>
      %cst_60 = arith.constant 1.000000e+00 : f32
      %284 = vector.broadcast %cst_60 : f32 to vector<8x128xf32>
      %285 = arith.subf %284, %277 : vector<8x128xf32>
      %286 = arith.mulf %285, %283 : vector<8x128xf32>
      %c0_61 = arith.constant 0 : index
      %c0_62 = arith.constant 0 : index
      %287 = vector.load %arg10[%c0_61, %c0_62] : memref<256x1xf32, #tpu.memory_space<vmem>>, vector<256x1xf32>
      %288 = vector.extract_strided_slice %287 {offsets = [0, 0], sizes = [128, 1], strides = [1, 1]} : vector<256x1xf32> to vector<128x1xf32>
      %cst_63 = arith.constant dense<0.000000e+00> : vector<8x1xf32>
      %289 = tpu.matmul %254, %288, %cst_63 {dimension_numbers = #tpu.dot_dimension_numbers<[1], [0], [0], [1], [0, 0, 1, 1], [], []>} : vector<8x128xf32>, vector<128x1xf32>, vector<8x1xf32> -> vector<8x1xf32>
      %290 = vector.extract_strided_slice %287 {offsets = [128, 0], sizes = [128, 1], strides = [1, 1]} : vector<256x1xf32> to vector<128x1xf32>
      %cst_64 = arith.constant dense<0.000000e+00> : vector<8x1xf32>
      %291 = tpu.matmul %286, %290, %cst_64 {dimension_numbers = #tpu.dot_dimension_numbers<[1], [0], [0], [1], [0, 0, 1, 1], [], []>} : vector<8x128xf32>, vector<128x1xf32>, vector<8x1xf32> -> vector<8x1xf32>
      %292 = arith.addf %289, %291 : vector<8x1xf32>
      %c0_65 = arith.constant 0 : index
      %c0_66 = arith.constant 0 : index
      %293 = vector.load %arg11[%c0_65, %c0_66] : memref<1x1xf32, #tpu.memory_space<vmem>>, vector<1x1xf32>
      %294 = vector.broadcast %293 : vector<1x1xf32> to vector<8x1xf32>
      %295 = arith.addf %292, %294 : vector<8x1xf32>
      %c0_67 = arith.constant 0 : index
      %c0_68 = arith.constant 0 : index
      %296 = vector.load %arg12[%c0_67, %c0_68] : memref<8x1xf32, #tpu.memory_space<vmem>>, vector<8x1xf32>
      tpu.vector_store %arg12[%c0_67, %c0_68], %295 {strides = array<i32>} : memref<8x1xf32, #tpu.memory_space<vmem>>, vector<8x1xf32>,
    } else {
    }
    return
  }
  func.func @transform_0(%arg0: i32, %arg1: i32) -> (i32, i32, i32) {
    %c0_i32 = arith.constant 0 : i32
    %c0_i32_0 = arith.constant 0 : i32
    return %arg1, %arg0, %c0_i32 : i32, i32, i32
  }
  func.func @transform_1(%arg0: i32, %arg1: i32) -> (i32, i32) {
    %c0_i32 = arith.constant 0 : i32
    %c0_i32_0 = arith.constant 0 : i32
    %c0_i32_1 = arith.constant 0 : i32
    return %c0_i32, %c0_i32_0 : i32, i32
  }
  func.func @transform_2(%arg0: i32, %arg1: i32) -> (i32, i32) {
    %c0_i32 = arith.constant 0 : i32
    %c0_i32_0 = arith.constant 0 : i32
    %c0_i32_1 = arith.constant 0 : i32
    return %c0_i32, %c0_i32_0 : i32, i32
  }
  func.func @transform_3(%arg0: i32, %arg1: i32) -> (i32, i32) {
    %c0_i32 = arith.constant 0 : i32
    %c0_i32_0 = arith.constant 0 : i32
    %c0_i32_1 = arith.constant 0 : i32
    return %c0_i32, %c0_i32_0 : i32, i32
  }
  func.func @transform_4(%arg0: i32, %arg1: i32) -> (i32, i32) {
    %c0_i32 = arith.constant 0 : i32
    %c0_i32_0 = arith.constant 0 : i32
    %c0_i32_1 = arith.constant 0 : i32
    return %c0_i32, %c0_i32_0 : i32, i32
  }
  func.func @transform_5(%arg0: i32, %arg1: i32) -> (i32, i32) {
    %c0_i32 = arith.constant 0 : i32
    %c0_i32_0 = arith.constant 0 : i32
    %c0_i32_1 = arith.constant 0 : i32
    return %c0_i32, %c0_i32_0 : i32, i32
  }
  func.func @transform_6(%arg0: i32, %arg1: i32) -> (i32, i32) {
    %c0_i32 = arith.constant 0 : i32
    %c0_i32_0 = arith.constant 0 : i32
    %c0_i32_1 = arith.constant 0 : i32
    return %c0_i32, %c0_i32_0 : i32, i32
  }
  func.func @transform_7(%arg0: i32, %arg1: i32) -> (i32, i32) {
    %c0_i32 = arith.constant 0 : i32
    %c0_i32_0 = arith.constant 0 : i32
    %c0_i32_1 = arith.constant 0 : i32
    return %c0_i32, %c0_i32_0 : i32, i32
  }
  func.func @transform_8(%arg0: i32, %arg1: i32) -> (i32, i32) {
    %c0_i32 = arith.constant 0 : i32
    %c0_i32_0 = arith.constant 0 : i32
    %c0_i32_1 = arith.constant 0 : i32
    return %c0_i32, %c0_i32_0 : i32, i32
  }
  func.func @transform_9(%arg0: i32, %arg1: i32) -> (i32, i32) {
    %c0_i32 = arith.constant 0 : i32
    %c0_i32_0 = arith.constant 0 : i32
    %c0_i32_1 = arith.constant 0 : i32
    return %c0_i32, %c0_i32_0 : i32, i32
  }
  func.func @transform_10(%arg0: i32, %arg1: i32) -> (i32, i32) {
    %c0_i32 = arith.constant 0 : i32
    %c0_i32_0 = arith.constant 0 : i32
    return %arg0, %c0_i32 : i32, i32
  }
}

</mosaic_0001>

<bundles_post_ra>
// kernel: gru_model_forward.1
= control target key start
LH: loop header
LB: loop body
LE: loop exit
PB: predicated region body
PF: predicated region fallthrough
CT: control target
= control target key end

     0   :  { %vm99_vm0 = vcmask 130048   ;;  %s2392_s1 = inlined_call_operand.vmem [shape: bf16[16,384], index: 1, kind: input, shape index: {}]   ;;  %s2393_s2 = inlined_call_operand.vmem [shape: bf16[128,384], index: 2, kind: input, shape index: {}]   ;;  %s2394_s0 = inlined_call_operand.vmem [shape: bf16[8,8,16], index: 0, kind: input, shape index: {}]   ;;  %s2395_s4 = inlined_call_operand.vmem [shape: f32[1,128], index: 4, kind: input, shape index: {}]   ;;  %s2396_s3 = inlined_call_operand.vmem [shape: f32[1,384], index: 3, kind: input, shape index: {}]   ;;  %s2397_s5 = inlined_call_operand.vmem [shape: bf16[16,384], index: 5, kind: input, shape index: {}]   ;;  %s2398_s7 = inlined_call_operand.vmem [shape: f32[1,128], index: 7, kind: input, shape index: {}]   ;;  %s2399_s6 = inlined_call_operand.vmem [shape: f32[1,384], index: 6, kind: input, shape index: {}]   ;;  %s2400_s8 = inlined_call_operand.vmem [shape: f32[256,1], index: 8, kind: input, shape index: {}]   ;;  %s2401_s9 = inlined_call_operand.<no memory space> [shape: f32[1,1], index: 9, kind: input, shape index: {}]   ;;  %s2402_s10 = inlined_call_operand.vmem [shape: f32[8,1], index: 10, kind: output, shape index: {}]  }
   0x1   :  { %v1292_v0 = vld [vmem:[%s2392_s1] sm:$0xf]  ;;  %v1449_v1 = vld [vmem:[%s2392_s1 + $0x8] sm:$0xf0]  ;;  %v1400_v2 = vld [vmem:[%s2393_s2 + $0xa8] sm:$0xf] }
   0x2   :  { %v1293_v3 = vor.u32 %v1449_v1, %v1292_v0  ;;  %v1473_v4 = vld [vmem:[%s2393_s2 + $0xb0] sm:$0xf0]  ;;  %v1388_v5 = vld [vmem:[%s2393_s2 + $0x90] sm:$0xf]  ;;  %v1649_v7 = vld [vmem:[%s2394_s0] sm:$0xff] }
   0x3   :  { %v1644_v6 = vor.u32 %v1473_v4, %v1400_v2  ;;  %v1470_v8 = vld [vmem:[%s2393_s2 + $0x98] sm:$0xf0]  ;;  %v1376_v10 = vld [vmem:[%s2393_s2 + $0x78] sm:$0xf]  ;;  %v1467_v11 = vld [vmem:[%s2393_s2 + $0x80] sm:$0xf0] }
   0x4   :  { %119 = vmatpush.bf16.msra.mxu0 %v1293_v3  ;;  %v1655_v9 = vor.u32 %v1470_v8, %v1388_v5  ;;  %v1408_v12 = vld [vmem:[%s2393_s2 + $0xb0] sm:$0xf]  ;;  %v1474_v13 = vld [vmem:[%s2393_s2 + $0xb8] sm:$0xf0]  ;;  %v1674_v15 = vor.u32 %v1467_v11, %v1376_v10  ;;  %v1396_v16 = vld [vmem:[%s2393_s2 + $0x98] sm:$0xf] }
   0x5   :  { %365 = vmatpush.bf16.msra.mxu3 %v1644_v6  ;;  %v1671_v14 = vor.u32 %v1474_v13, %v1408_v12  ;;  %v1471_v17 = vld [vmem:[%s2393_s2 + $0xa0] sm:$0xf0]  ;;  %v1364_v18 = vld [vmem:[%s2393_s2 + $0x60] sm:$0xf]  ;;  %v1464_v19 = vld [vmem:[%s2393_s2 + $0x68] sm:$0xf0] }
   0x6   :  { %v1689_v20 = vor.u32 %v1471_v17, %v1396_v16  ;;  %v1384_v21 = vld [vmem:[%s2393_s2 + $0x80] sm:$0xf]  ;;  %v1468_v22 = vld [vmem:[%s2393_s2 + $0x88] sm:$0xf0]  ;;  %v1698_v23 = vor.u32 %v1464_v19, %v1364_v18  ;;  %v1352_v25 = vld [vmem:[%s2393_s2 + $0x48] sm:$0xf] }
   0x7   :  { %1302 = vmatmul.msk.bf16.vlgmr.msra.gmra.mxu0 %vm99_vm0, %v1649_v7  ;;  %v1701_v24 = vor.u32 %v1468_v22, %v1384_v21  ;;  %v1461_v26 = vld [vmem:[%s2393_s2 + $0x50] sm:$0xf0]  ;;  %v1340_v28 = vld [vmem:[%s2393_s2 + $0x30] sm:$0xf]  ;;  %v1458_v29 = vld [vmem:[%s2393_s2 + $0x38] sm:$0xf0] }
   0x8   :  { %391 = vmatpush.bf16.msrb.mxu0 %v1671_v14  ;;  %v1710_v27 = vor.u32 %v1461_v26, %v1352_v25  ;;  %v1372_v30 = vld [vmem:[%s2393_s2 + $0x68] sm:$0xf]  ;;  %v1465_v31 = vld [vmem:[%s2393_s2 + $0x70] sm:$0xf0]  ;;  %v1733_v34 = vor.u32 %v1458_v29, %v1340_v28  ;;  %v1328_v35 = vld [vmem:[%s2393_s2 + $0x18] sm:$0xf] }
   0x9   :  { %366 = vmatpush.bf16.msra.mxu3 %v1655_v9  ;;  %v1728_v32 = vld [vmem:[%s2394_s0 + $0x8] sm:$0xff]  ;;  %v1730_v33 = vor.u32 %v1465_v31, %v1372_v30  ;;  %v1455_v36 = vld [vmem:[%s2393_s2 + $0x20] sm:$0xf0]  ;;  %v1360_v37 = vld [vmem:[%s2393_s2 + $0x50] sm:$0xf]  ;;  %v1573_v4 = vmov 0.0|0.0  }
   0xa   :  { %v1462_v38 = vld [vmem:[%s2393_s2 + $0x58] sm:$0xf0]  ;;  %v1448_v40 = vld [vmem:[%s2392_s1 + $0x4] sm:$0xf]  ;;  %v1294_v41 = vld [vmem:[%s2392_s1 + $0xc] sm:$0xf0]  ;;  %v1759_v43 = vor.u32 %v1455_v36, %v1328_v35 }
   0xb   :  { %v1750_v39 = vor.u32 %v1462_v38, %v1360_v37  ;;  %v1297_v42 = vor.u32 %v1448_v40, %v1294_v41  ;;  %v1316_v44 = vld [vmem:[%s2393_s2] sm:$0xf]  ;;  %v1452_v45 = vld [vmem:[%s2393_s2 + $0x8] sm:$0xf0]  ;;  %v1348_v46 = vld [vmem:[%s2393_s2 + $0x38] sm:$0xf] }
   0xc   :  { %392 = vmatpush.bf16.msrb.mxu0 %v1689_v20  ;;  %v1459_v47 = vld [vmem:[%s2393_s2 + $0x40] sm:$0xf0]  ;;  %v1472_v48 = vld [vmem:[%s2393_s2 + $0xac] sm:$0xf]  ;;  %v1402_v49 = vld [vmem:[%s2393_s2 + $0xb4] sm:$0xf0]  ;;  %v1784_v51 = vor.u32 %v1452_v45, %v1316_v44 }
   0xd   :  { %367 = vmatpush.bf16.msra.mxu3 %v1674_v15  ;;  %148 = vmatpush.bf16.msra.mxu1 %v1297_v42  ;;  %v1780_v50 = vor.u32 %v1459_v47, %v1348_v46  ;;  %v1788_v52 = vor.u32 %v1472_v48, %v1402_v49  ;;  %v1300_v53 = vld [vmem:[%s2392_s1 + $0x8] sm:$0xf]  ;;  %v1450_v54 = vld [vmem:[%s2392_s1 + $0x10] sm:$0xf0]  ;;  %v1336_v55 = vld [vmem:[%s2393_s2 + $0x20] sm:$0xf] }
   0xe   :  { %v1469_v56 = vld [vmem:[%s2393_s2 + $0x94] sm:$0xf]  ;;  %v1390_v57 = vld [vmem:[%s2393_s2 + $0x9c] sm:$0xf0]  ;;  %v1301_v58 = vor.u32 %v1450_v54, %v1300_v53  ;;  %v1456_v59 = vld [vmem:[%s2393_s2 + $0x28] sm:$0xf0] }
   0xf   :  { %v1810_v60 = vor.u32 %v1456_v59, %v1336_v55  ;;  %v1324_v61 = vld [vmem:[%s2393_s2 + $0x8] sm:$0xf]  ;;  %v1453_v62 = vld [vmem:[%s2393_s2 + $0x10] sm:$0xf0]  ;;  %v1820_v63 = vor.u32 %v1469_v56, %v1390_v57  ;;  %v1466_v2 = vld [vmem:[%s2393_s2 + $0x7c] sm:$0xf] }
  0x10   :  { %393 = vmatpush.bf16.msrb.mxu0 %v1701_v24  ;;  %1306 = vmatmul.msk.bf16.vlgmr.msra.gmra.mxu1 %vm99_vm0, %v1649_v7  ;;  %v1823_v0 = vor.u32 %v1453_v62, %v1324_v61  ;;  %v1828_v1 = vld [vmem:[%s2394_s0 + $0x10] sm:$0xff]  ;;  %v1378_v3 = vld [vmem:[%s2393_s2 + $0x84] sm:$0xf0]  ;;  %v1463_v8 = vld [vmem:[%s2393_s2 + $0x64] sm:$0xf] }
  0x11   :  { %368 = vmatpush.bf16.msra.mxu3 %v1698_v23  ;;  %453 = vmatpush.bf16.msrb.mxu1 %v1644_v6  ;;  %v1842_v5 = vor.u32 %v1466_v2, %v1378_v3  ;;  %v1366_v10 = vld [vmem:[%s2393_s2 + $0x6c] sm:$0xf0]  ;;  %v1460_v11 = vld [vmem:[%s2393_s2 + $0x4c] sm:$0xf]  ;;  %v1354_v12 = vld [vmem:[%s2393_s2 + $0x54] sm:$0xf0] }
  0x12   :  { %177 = vmatpush.bf16.msra.mxu2 %v1301_v58  ;;  %v1871_v13 = vor.u32 %v1460_v11, %v1354_v12  ;;  %v1457_v16 = vld [vmem:[%s2393_s2 + $0x34] sm:$0xf]  ;;  %v1342_v17 = vld [vmem:[%s2393_s2 + $0x3c] sm:$0xf0]  ;;  %v1447_v19 = vld [vmem:[%s2394_s0 + $0x18] sm:$0xff] }
  0x13   :  { %v1883_v18 = vor.u32 %v1457_v16, %v1342_v17  ;;  %v1454_v21 = vld [vmem:[%s2393_s2 + $0x1c] sm:$0xf]  ;;  %v1330_v22 = vld [vmem:[%s2393_s2 + $0x24] sm:$0xf0]  ;;  %v1451_v26 = vld [vmem:[%s2393_s2 + $0x4] sm:$0xf] }
  0x14   :  { %394 = vmatpush.bf16.msrb.mxu0 %v1730_v33  ;;  %v1900_v25 = vor.u32 %v1454_v21, %v1330_v22  ;;  %v1318_v28 = vld [vmem:[%s2393_s2 + $0xc] sm:$0xf0]  ;;  %v55_v31 = vld [vmem:[%s2396_s3] sm:$0x7] }
  0x15   :  { %369 = vmatpush.bf16.msra.mxu3 %v1710_v27  ;;  %454 = vmatpush.bf16.msrb.mxu1 %v1655_v9  ;;  %v1914_v29 = vor.u32 %v1451_v26, %v1318_v28  ;;  %v1984_v61 = vperm.slane %v55_v31, 1  ;;  %v1992_v22 = vld [vmem:[%s2395_s4] ss:$0 sm:$0xff] }
  0x16   :  { %466 = vmatpush.bf16.msrb.mxu2 %v1788_v52 }
  0x17   :  { %1303 = vmatmul.msk.bf16.gmra.mxu0 %vm99_vm0, %v1728_v32  ;;  %1310 = vmatmul.msk.bf16.vlgmr.msra.gmra.mxu2 %vm99_vm0, %v1649_v7  ;;  %v1857_v7 = vor.u32 %v1463_v8, %v1366_v10 }
  0x18   :  { %395 = vmatpush.bf16.msrb.mxu0 %v1750_v39 }
  0x19   :  { %370 = vmatpush.bf16.msra.mxu3 %v1733_v34  ;;  %455 = vmatpush.bf16.msrb.mxu1 %v1674_v15 }
  0x1a   :  { %467 = vmatpush.bf16.msrb.mxu2 %v1820_v63 }
  0x1c   :  { %396 = vmatpush.bf16.msrb.mxu0 %v1780_v50 }
  0x1d   :  { %371 = vmatpush.bf16.msra.mxu3 %v1759_v43  ;;  %456 = vmatpush.bf16.msrb.mxu1 %v1698_v23 }
  0x1e   :  { %468 = vmatpush.bf16.msrb.mxu2 %v1842_v5 }
  0x20   :  { %397 = vmatpush.bf16.msrb.mxu0 %v1810_v60  ;;  %1307 = vmatmul.msk.bf16.gmra.mxu1 %vm99_vm0, %v1728_v32 }
  0x21   :  { %372 = vmatpush.bf16.msra.mxu3 %v1784_v51  ;;  %457 = vmatpush.bf16.msrb.mxu1 %v1710_v27 }
  0x22   :  { %469 = vmatpush.bf16.msrb.mxu2 %v1857_v7 }
  0x24   :  { %373 = vmatmul.bf16.vlgmr.msra.gmra.mxu3 %v1573_v4  ;;  %398 = vmatpush.bf16.msrb.mxu0 %v1823_v0 }
  0x25   :  { %378 = vmatpush.bf16.msrb.mxu3 %v1788_v52  ;;  %458 = vmatpush.bf16.msrb.mxu1 %v1733_v34 }
  0x26   :  { %470 = vmatpush.bf16.msrb.mxu2 %v1871_v13 }
  0x27   :  { %1304 = vmatmul.msk.bf16.gmra.mxu0 %vm99_vm0, %v1828_v1  ;;  %1311 = vmatmul.msk.bf16.gmra.mxu2 %vm99_vm0, %v1728_v32  ;;  %v57_v32 = vperm.slane %v55_v31, 0 }
  0x28   :  { %541 = vmatpush.bf16.msra.mxu0 %v1644_v6 }
  0x29   :  { %379 = vmatpush.bf16.msrb.mxu3 %v1820_v63  ;;  %459 = vmatpush.bf16.msrb.mxu1 %v1759_v43 }
  0x2a   :  { %471 = vmatpush.bf16.msrb.mxu2 %v1883_v18 }
  0x2c   :  { %542 = vmatpush.bf16.msra.mxu0 %v1655_v9 }
  0x2d   :  { %380 = vmatpush.bf16.msrb.mxu3 %v1842_v5  ;;  %460 = vmatpush.bf16.msrb.mxu1 %v1784_v51 }
  0x2e   :  { %472 = vmatpush.bf16.msrb.mxu2 %v1900_v25 }
  0x30   :  { %543 = vmatpush.bf16.msra.mxu0 %v1674_v15  ;;  %1308 = vmatmul.msk.bf16.gmra.mxu1 %vm99_vm0, %v1828_v1 }
  0x31   :  { %381 = vmatpush.bf16.msrb.mxu3 %v1857_v7  ;;  %554 = vmatpush.bf16.msra.mxu1 %v1788_v52 }
  0x32   :  { %473 = vmatpush.bf16.msrb.mxu2 %v1914_v29 }
  0x34   :  { %544 = vmatpush.bf16.msra.mxu0 %v1698_v23 }
  0x35   :  { %382 = vmatpush.bf16.msrb.mxu3 %v1871_v13  ;;  %555 = vmatpush.bf16.msra.mxu1 %v1820_v63 }
  0x36   :  { %567 = vmatpush.bf16.msra.mxu2 %v1671_v14 }
  0x37   :  { %1305 = vmatmul.msk.bf16.gmra.mxu0 %vm99_vm0, %v1447_v19  ;;  %1312 = vmatmul.msk.bf16.gmra.mxu2 %vm99_vm0, %v1828_v1 }
  0x38   :  { %545 = vmatpush.bf16.msra.mxu0 %v1710_v27 }
  0x39   :  { %383 = vmatpush.bf16.msrb.mxu3 %v1883_v18  ;;  %556 = vmatpush.bf16.msra.mxu1 %v1842_v5 }
  0x3a   :  { %568 = vmatpush.bf16.msra.mxu2 %v1689_v20 }
  0x3c   :  { %546 = vmatpush.bf16.msra.mxu0 %v1733_v34 }
  0x3d   :  { %384 = vmatpush.bf16.msrb.mxu3 %v1900_v25  ;;  %557 = vmatpush.bf16.msra.mxu1 %v1857_v7 }
  0x3e   :  { %569 = vmatpush.bf16.msra.mxu2 %v1701_v24 }
  0x40   :  { %547 = vmatpush.bf16.msra.mxu0 %v1759_v43  ;;  %1309 = vmatmul.msk.bf16.gmra.mxu1 %vm99_vm0, %v1447_v19 }
  0x41   :  { %385 = vmatpush.bf16.msrb.mxu3 %v1914_v29  ;;  %558 = vmatpush.bf16.msra.mxu1 %v1871_v13 }
  0x42   :  { %570 = vmatpush.bf16.msra.mxu2 %v1730_v33 }
  0x44   :  { %386 = vmatmul.bf16.vlgmr.msrb.gmra.mxu3 %v1573_v4  ;;  %548 = vmatpush.bf16.msra.mxu0 %v1784_v51 }
  0x45   :  { %479 = vmatpush.bf16.msra.mxu3 %v1671_v14  ;;  %559 = vmatpush.bf16.msra.mxu1 %v1883_v18 }
  0x46   :  { %571 = vmatpush.bf16.msra.mxu2 %v1750_v39 }
  0x47   :  { %399 = vmatmul.bf16.vlgmr.msrb.gmra.mxu0 %v1573_v4  ;;  %1313 = vmatmul.msk.bf16.gmra.mxu2 %vm99_vm0, %v1447_v19 }
  0x48   :  { %642 = vmatpush.bf16.msrb.mxu0 %v1788_v52 }
  0x49   :  { %480 = vmatpush.bf16.msra.mxu3 %v1689_v20  ;;  %560 = vmatpush.bf16.msra.mxu1 %v1900_v25 }
  0x4a   :  { %572 = vmatpush.bf16.msra.mxu2 %v1780_v50 }
  0x4c   :  { %643 = vmatpush.bf16.msrb.mxu0 %v1820_v63 }
  0x4d   :  { %481 = vmatpush.bf16.msra.mxu3 %v1701_v24  ;;  %561 = vmatpush.bf16.msra.mxu1 %v1914_v29 }
  0x4e   :  { %573 = vmatpush.bf16.msra.mxu2 %v1810_v60 }
  0x50   :  { %644 = vmatpush.bf16.msrb.mxu0 %v1842_v5 }
  0x51   :  { %482 = vmatpush.bf16.msra.mxu3 %v1730_v33 }
  0x52   :  { %574 = vmatpush.bf16.msra.mxu2 %v1823_v0 }
  0x54   :  { %645 = vmatpush.bf16.msrb.mxu0 %v1857_v7 }
  0x55   :  { %483 = vmatpush.bf16.msra.mxu3 %v1750_v39 }
  0x58   :  { %646 = vmatpush.bf16.msrb.mxu0 %v1871_v13 }
  0x59   :  { %484 = vmatpush.bf16.msra.mxu3 %v1780_v50 }
  0x5c   :  { %647 = vmatpush.bf16.msrb.mxu0 %v1883_v18 }
  0x5d   :  { %485 = vmatpush.bf16.msra.mxu3 %v1810_v60 }
  0x60   :  { %648 = vmatpush.bf16.msrb.mxu0 %v1900_v25 }
  0x61   :  { %486 = vmatpush.bf16.msra.mxu3 %v1823_v0 }
  0x64   :  { %649 = vmatpush.bf16.msrb.mxu0 %v1914_v29 }
  0x65   :  { %629 = vmatpush.bf16.msrb.mxu3 %v1644_v6 }
  0x69   :  { %630 = vmatpush.bf16.msrb.mxu3 %v1655_v9 }
  0x6d   :  { %631 = vmatpush.bf16.msrb.mxu3 %v1674_v15 }
  0x71   :  { %632 = vmatpush.bf16.msrb.mxu3 %v1698_v23 }
  0x75   :  { %633 = vmatpush.bf16.msrb.mxu3 %v1710_v27 }
  0x79   :  { %634 = vmatpush.bf16.msrb.mxu3 %v1733_v34 }
  0x7d   :  { %635 = vmatpush.bf16.msrb.mxu3 %v1759_v43 }
  0x81   :  { %636 = vmatpush.bf16.msrb.mxu3 %v1784_v51 }
  0x84   :  { %v121_v30 = vpop.f32.mrf.mxu0 }
  0x85   :  { %v122_v45 = vadd.f32 %v121_v30, %v57_v32 }
  0x8c   :  { %v123_v35 = vpop.f32.mrf.mxu0 }
  0x8d   :  { %v1972_v36 = vadd.f32 %v123_v35, %v57_v32  ;;  %v150_v2 = vpop.f32.mrf.mxu1 }
  0x8e   :  { %v151_v3 = vadd.f32 %v150_v2, %v1984_v61 }
  0x94   :  { %v126_v37 = vpop.f32.mrf.mxu0 }
  0x95   :  { %v1974_v38 = vadd.f32 %v126_v37, %v57_v32 }
  0x9c   :  { %v128_v40 = vpop.f32.mrf.mxu0 }
  0x9d   :  { %v1976_v41 = vadd.f32 %v128_v40, %v57_v32 }
  0xa4   :  { %v131_v42 = vpop.f32.mrf.mxu0 }
  0xa5   :  { %v1978_v44 = vadd.f32 %v131_v42, %v57_v32  ;;  %v1995_v42 = vperm.slane %v55_v31, 2 }
  0xa7   :  { %v374_v46 = vpop.f32.mrf.mxu3 }
  0xa8   :  { %v404_v47 = vadd.f32 %v374_v46, %v122_v45  ;;  %v179_v46 = vpop.f32.mrf.mxu2 }
  0xaa   :  { %v1410_v48 = vmul.f32 -1.442695, %v404_v47 }
  0xac   :  { %1482 = vpow2.f32 %v1410_v48  ;;  %v133_v49 = vpop.f32.mrf.mxu0 }
  0xad   :  { %v1980_v53 = vadd.f32 %v133_v49, %v57_v32  ;;  %v180_v49 = vadd.f32 %v179_v46, %v1995_v42 }
  0xaf   :  { %v376_v54 = vpop.f32.mrf.mxu3 }
  0xb2   :  { %v1483_v55 = vpop.eup %1482 }
  0xb3   :  { %v408_v57 = vadd.f32 1.0, %v1483_v55 }
  0xb4   :  { %v136_v56 = vpop.f32.mrf.mxu0 }
  0xb5   :  { %v1982_v58 = vadd.f32 %v136_v56, %v57_v32  ;;  %1484 = vrcp.f32 %v408_v57  ;;  %v420_v30 = vand.u32 2147483648, %v408_v57  ;;  %vm414_vm2 = vweird.f32 %v408_v57 }
  0xb6   :  { %v418_v35 = vand.u32 2147483647, %v408_v57 }
  0xb7   :  { %2403 = vst [vmem:[#allocation4_spill] sm:$0xff] %v1982_v58  ;;  %v421_v45 = vor.u32 1.1754944e-38, %v420_v30 }
  0xb8   :  { %vm419_vm4 = vcmp.eq.f32.partialorder %v418_v35, 8.507059e+37 }
  0xbb   :  { %v1485_v1 = vpop.eup %1484 }
  0xbc   :  { %v138_v59 = vpop.f32.mrf.mxu0  ;;  %v410_v4 = vmul.f32 %v1485_v1, %v408_v57  ;;  %vm415_vm1 = vweird.f32 %v1485_v1 }
  0xbd   :  { %v1986_v62 = vadd.f32 %v138_v59, %v57_v32  ;;  %vm416_vm3 = vmor %vm414_vm2, %vm415_vm1 }
  0xbe   :  { %v411_v12 = vsub.f32 1.0, %v410_v4 }
  0xbf   :  { %2404 = vst [vmem:[#allocation5_spill] sm:$0xff] %v1986_v62 }
  0xc0   :  { %v412_v17 = vmul.f32 %v1485_v1, %v411_v12 }
  0xc2   :  { %v413_v26 = vadd.f32 %v1485_v1, %v412_v17 }
  0xc4   :  { %v400_v10 = vpop.f32.mrf.mxu0  ;;  %v417_v37 = vsel %vm416_vm3, %v1485_v1, %v413_v26  ;;  %v181_v26 = vpop.f32.mrf.mxu2 }
  0xc5   :  { %v444_v40 = vadd.f32 %v1992_v22, %v400_v10  ;;  %v422_v47 = vsel %vm419_vm4, %v421_v45, %v417_v37 }
  0xc7   :  { %v387_v8 = vpop.f32.mrf.mxu3  ;;  %v445_v48 = vmul.f32 %v444_v40, %v422_v47 }
  0xc8   :  { %v424_v11 = vadd.f32 %v387_v8, %v151_v3 }
  0xc9   :  { %v446_v56 = vadd.f32 %v445_v48, %v180_v49 }
  0xca   :  { %v1411_v16 = vmul.f32 -1.442695, %v424_v11 }
  0xcc   :  { %1486 = vpow2.f32 %v1411_v16  ;;  %v402_v21 = vpop.f32.mrf.mxu0  ;;  %v2028_v30 = vpop.f32.mrf.mxu2 }
  0xcd   :  { %v152_v21 = vpop.f32.mrf.mxu1 }
  0xcf   :  { %v389_v19 = vpop.f32.mrf.mxu3 }
  0xd2   :  { %v1487_v28 = vpop.eup %1486 }
  0xd3   :  { %v428_v32 = vadd.f32 1.0, %v1487_v28 }
  0xd4   :  { %v2032_v35 = vpop.f32.mrf.mxu2 }
  0xd5   :  { %1488 = vrcp.f32 %v428_v32  ;;  %v440_v2 = vand.u32 2147483648, %v428_v32  ;;  %v438_v3 = vand.u32 2147483647, %v428_v32  ;;  %vm434_vm6 = vweird.f32 %v428_v32  ;;  %v2026_v28 = vpop.f32.mrf.mxu1 }
  0xd6   :  { %1490 = vtanh.f32 %v446_v56 }
  0xd7   :  { %v441_v31 = vor.u32 1.1754944e-38, %v440_v2  ;;  %vm439_vm8 = vcmp.eq.f32.partialorder %v438_v3, 8.507059e+37  ;;  %v153_v2 = vadd.f32 %v152_v21, %v1984_v61 }
  0xdb   :  { %v1489_v54 = vpop.eup %1488 }
  0xdc   :  { %v430_v55 = vmul.f32 %v1489_v54, %v428_v32  ;;  %vm435_vm5 = vweird.f32 %v1489_v54  ;;  %v1491_v11 = vpop.eup %1490  ;;  %v2036_v40 = vpop.f32.mrf.mxu2 }
  0xdd   :  { %vm436_vm7 = vmor %vm434_vm6, %vm435_vm5  ;;  %v2030_v32 = vpop.f32.mrf.mxu1 }
  0xde   :  { %v431_v59 = vsub.f32 1.0, %v430_v55 }
  0xe0   :  { %v432_v57 = vmul.f32 %v1489_v54, %v431_v59 }
  0xe2   :  { %v433_v1 = vadd.f32 %v1489_v54, %v432_v57 }
  0xe4   :  { %v437_v4 = vsel %vm436_vm7, %v1489_v54, %v433_v1  ;;  %v2040_v46 = vpop.f32.mrf.mxu2 }
  0xe5   :  { %v442_v8 = vsel %vm439_vm8, %v441_v31, %v437_v4  ;;  %v2034_v37 = vpop.f32.mrf.mxu1 }
  0xe6   :  { %v448_v10 = vsub.f32 1.0, %v442_v8  ;;  %v450_v16 = vmul.f32 0.0, %v442_v8 }
  0xe8   :  { %v449_v12 = vmul.f32 %v1491_v11, %v448_v10 }
  0xea   :  { %v1998_v17 = vadd.f32 %v450_v16, %v449_v12 }
  0xec   :  { %v452_v19 = vpack.c.bf16 %v1998_v17, %v1998_v17  ;;  %v2044_v48 = vpop.f32.mrf.mxu2 }
  0xed   :  { %v2038_v45 = vpop.f32.mrf.mxu1  ;;  %2405 = vst [vmem:[#allocation6_spill] sm:$0xff] %v2044_v48 }
  0xee   :  { %461 = vmatmul.bf16.vlgmr.msrb.gmra.mxu1 %v452_v19  ;;  %474 = vmatmul.bf16.vlgmr.msrb.gmra.mxu2 %v452_v19 }
  0xef   :  { %487 = vmatmul.bf16.vlgmr.msra.gmra.mxu3 %v452_v19  ;;  %655 = vmatpush.bf16.msrb.mxu1 %v1671_v14 }
  0xf0   :  { %717 = vmatpush.bf16.msrb.mxu2 %v1644_v6  ;;  %730 = vmatpush.bf16.msra.mxu3 %v1788_v52 }
  0xf3   :  { %656 = vmatpush.bf16.msrb.mxu1 %v1689_v20 }
  0xf4   :  { %718 = vmatpush.bf16.msrb.mxu2 %v1655_v9  ;;  %731 = vmatpush.bf16.msra.mxu3 %v1820_v63  ;;  %v2048_v54 = vpop.f32.mrf.mxu2 }
  0xf5   :  { %v2042_v47 = vpop.f32.mrf.mxu1  ;;  %2407 = vst [vmem:[#allocation8_spill] sm:$0xff] %v2048_v54 }
  0xf7   :  { %657 = vmatpush.bf16.msrb.mxu1 %v1701_v24 }
  0xf8   :  { %719 = vmatpush.bf16.msrb.mxu2 %v1674_v15  ;;  %732 = vmatpush.bf16.msra.mxu3 %v1842_v5 }
  0xfb   :  { %658 = vmatpush.bf16.msrb.mxu1 %v1730_v33 }
  0xfc   :  { %720 = vmatpush.bf16.msrb.mxu2 %v1698_v23  ;;  %733 = vmatpush.bf16.msra.mxu3 %v1857_v7 }
  0xfd   :  { %v2046_v49 = vpop.f32.mrf.mxu1 }
  0xfe   :  { %2406 = vst [vmem:[#allocation7_spill] sm:$0xff] %v2046_v49 }
  0xff   :  { %659 = vmatpush.bf16.msrb.mxu1 %v1750_v39 }
 0x100   :  { %721 = vmatpush.bf16.msrb.mxu2 %v1710_v27  ;;  %734 = vmatpush.bf16.msra.mxu3 %v1871_v13 }
 0x103   :  { %660 = vmatpush.bf16.msrb.mxu1 %v1780_v50 }
 0x104   :  { %722 = vmatpush.bf16.msrb.mxu2 %v1733_v34  ;;  %735 = vmatpush.bf16.msra.mxu3 %v1883_v18 }
 0x107   :  { %661 = vmatpush.bf16.msrb.mxu1 %v1810_v60 }
 0x108   :  { %723 = vmatpush.bf16.msrb.mxu2 %v1759_v43  ;;  %736 = vmatpush.bf16.msra.mxu3 %v1900_v25 }
 0x10b   :  { %662 = vmatpush.bf16.msrb.mxu1 %v1823_v0 }
 0x10c   :  { %724 = vmatpush.bf16.msrb.mxu2 %v1784_v51  ;;  %737 = vmatpush.bf16.msra.mxu3 %v1914_v29 }
 0x16b   :  { %v462_v55 = vpop.f32.mrf.mxu1 }
 0x16c   :  { %v492_v56 = vadd.f32 %v462_v55, %v1972_v36 }
 0x16e   :  { %v1412_v59 = vmul.f32 -1.442695, %v492_v56 }
 0x170   :  { %1492 = vpow2.f32 %v1412_v59 }
 0x171   :  { %v475_v57 = vpop.f32.mrf.mxu2 }
 0x172   :  { %v512_v3 = vadd.f32 %v475_v57, %v153_v2  ;;  %v488_v1 = vpop.f32.mrf.mxu3 }
 0x173   :  { %v464_v31 = vpop.f32.mrf.mxu1 }
 0x174   :  { %v1413_v4 = vmul.f32 -1.442695, %v512_v3 }
 0x176   :  { %v1493_v8 = vpop.eup %1492  ;;  %1494 = vpow2.f32 %v1413_v4 }
 0x177   :  { %v496_v10 = vadd.f32 1.0, %v1493_v8 }
 0x179   :  { %1496 = vrcp.f32 %v496_v10  ;;  %v477_v11 = vpop.f32.mrf.mxu2  ;;  %v508_v56 = vand.u32 2147483648, %v496_v10  ;;  %v506_v59 = vand.u32 2147483647, %v496_v10  ;;  %vm502_vm10 = vweird.f32 %v496_v10 }
 0x17a   :  { %v490_v12 = vpop.f32.mrf.mxu3  ;;  %v532_v11 = vadd.f32 %v1992_v22, %v488_v1 }
 0x17b   :  { %v509_v3 = vor.u32 1.1754944e-38, %v508_v56  ;;  %vm507_vm12 = vcmp.eq.f32.partialorder %v506_v59, 8.507059e+37  ;;  %v182_v12 = vadd.f32 %v181_v26, %v1995_v42 }
 0x17c   :  { %v1495_v16 = vpop.eup %1494 }
 0x17d   :  { %v516_v19 = vadd.f32 1.0, %v1495_v16 }
 0x17f   :  { %v1497_v54 = vpop.eup %1496  ;;  %1498 = vrcp.f32 %v516_v19  ;;  %v526_v49 = vand.u32 2147483647, %v516_v19  ;;  %vm522_vm14 = vweird.f32 %v516_v19 }
 0x180   :  { %v498_v36 = vmul.f32 %v1497_v54, %v496_v10  ;;  %vm503_vm9 = vweird.f32 %v1497_v54 }
 0x181   :  { %vm504_vm11 = vmor %vm502_vm10, %vm503_vm9  ;;  %vm527_vm1 = vcmp.eq.f32.partialorder %v526_v49, 8.507059e+37 }
 0x182   :  { %v499_v55 = vsub.f32 1.0, %v498_v36  ;;  %v528_v36 = vand.u32 2147483648, %v516_v19 }
 0x184   :  { %v500_v21 = vmul.f32 %v1497_v54, %v499_v55  ;;  %v529_v10 = vor.u32 1.1754944e-38, %v528_v36 }
 0x185   :  { %v1499_v2 = vpop.eup %1498 }
 0x186   :  { %v518_v57 = vmul.f32 %v1499_v2, %v516_v19  ;;  %v501_v31 = vadd.f32 %v1497_v54, %v500_v21  ;;  %vm523_vm13 = vweird.f32 %v1499_v2 }
 0x187   :  { %vm524_vm15 = vmor %vm522_vm14, %vm523_vm13 }
 0x188   :  { %v519_v4 = vsub.f32 1.0, %v518_v57  ;;  %v505_v8 = vsel %vm504_vm11, %v1497_v54, %v501_v31 }
 0x189   :  { %v510_v16 = vsel %vm507_vm12, %v509_v3, %v505_v8 }
 0x18a   :  { %v520_v62 = vmul.f32 %v1499_v2, %v519_v4  ;;  %v533_v55 = vmul.f32 %v532_v11, %v510_v16 }
 0x18c   :  { %v534_v48 = vadd.f32 %v533_v55, %v182_v12  ;;  %v521_v58 = vadd.f32 %v1499_v2, %v520_v62 }
 0x18e   :  { %1500 = vtanh.f32 %v534_v48  ;;  %v525_v56 = vsel %vm524_vm15, %v1499_v2, %v521_v58  ;;  %v156_v58 = vadd.f32 %v2026_v28, %v1984_v61 }
 0x18f   :  { %v530_v54 = vsel %vm527_vm1, %v529_v10, %v525_v56 }
 0x190   :  { %v536_v21 = vsub.f32 1.0, %v530_v54  ;;  %v538_v26 = vmul.f32 %v530_v54, %v1998_v17 }
 0x194   :  { %v1501_v59 = vpop.eup %1500 }
 0x195   :  { %v537_v1 = vmul.f32 %v1501_v59, %v536_v21 }
 0x197   :  { %v2055_v57 = vadd.f32 %v538_v26, %v537_v1 }
 0x199   :  { %v540_v31 = vpack.c.bf16 %v2055_v57, %v2055_v57 }
 0x19b   :  { %549 = vmatmul.bf16.vlgmr.msra.gmra.mxu0 %v540_v31  ;;  %562 = vmatmul.bf16.vlgmr.msra.gmra.mxu1 %v540_v31 }
 0x19c   :  { %575 = vmatmul.bf16.vlgmr.msra.gmra.mxu2 %v540_v31  ;;  %743 = vmatpush.bf16.msra.mxu0 %v1671_v14 }
 0x19d   :  { %805 = vmatpush.bf16.msra.mxu1 %v1644_v6  ;;  %818 = vmatpush.bf16.msra.mxu2 %v1788_v52 }
 0x1a0   :  { %744 = vmatpush.bf16.msra.mxu0 %v1689_v20 }
 0x1a1   :  { %806 = vmatpush.bf16.msra.mxu1 %v1655_v9  ;;  %819 = vmatpush.bf16.msra.mxu2 %v1820_v63 }
 0x1a4   :  { %745 = vmatpush.bf16.msra.mxu0 %v1701_v24 }
 0x1a5   :  { %807 = vmatpush.bf16.msra.mxu1 %v1674_v15  ;;  %820 = vmatpush.bf16.msra.mxu2 %v1842_v5 }
 0x1a8   :  { %746 = vmatpush.bf16.msra.mxu0 %v1730_v33 }
 0x1a9   :  { %808 = vmatpush.bf16.msra.mxu1 %v1698_v23  ;;  %821 = vmatpush.bf16.msra.mxu2 %v1857_v7 }
 0x1ac   :  { %747 = vmatpush.bf16.msra.mxu0 %v1750_v39 }
 0x1ad   :  { %809 = vmatpush.bf16.msra.mxu1 %v1710_v27  ;;  %822 = vmatpush.bf16.msra.mxu2 %v1871_v13 }
 0x1b0   :  { %748 = vmatpush.bf16.msra.mxu0 %v1780_v50 }
 0x1b1   :  { %810 = vmatpush.bf16.msra.mxu1 %v1733_v34  ;;  %823 = vmatpush.bf16.msra.mxu2 %v1883_v18 }
 0x1b4   :  { %749 = vmatpush.bf16.msra.mxu0 %v1810_v60 }
 0x1b5   :  { %811 = vmatpush.bf16.msra.mxu1 %v1759_v43  ;;  %824 = vmatpush.bf16.msra.mxu2 %v1900_v25 }
 0x1b8   :  { %750 = vmatpush.bf16.msra.mxu0 %v1823_v0 }
 0x1b9   :  { %812 = vmatpush.bf16.msra.mxu1 %v1784_v51  ;;  %825 = vmatpush.bf16.msra.mxu2 %v1914_v29 }
 0x218   :  { %v550_v62 = vpop.f32.mrf.mxu0  ;;  %v563_v17 = vpop.f32.mrf.mxu1 }
 0x219   :  { %v580_v48 = vadd.f32 %v550_v62, %v1974_v38  ;;  %v600_v49 = vadd.f32 %v563_v17, %v156_v58 }
 0x21b   :  { %v1414_v19 = vmul.f32 -1.442695, %v580_v48  ;;  %v1415_v2 = vmul.f32 -1.442695, %v600_v49 }
 0x21d   :  { %1502 = vpow2.f32 %v1414_v19 }
 0x21e   :  { %1504 = vpow2.f32 %v1415_v2  ;;  %v185_v2 = vadd.f32 %v2028_v30, %v1995_v42 }
 0x21f   :  { %v576_v3 = vpop.f32.mrf.mxu2 }
 0x220   :  { %v552_v4 = vpop.f32.mrf.mxu0  ;;  %v565_v8 = vpop.f32.mrf.mxu1  ;;  %v620_v48 = vadd.f32 %v1992_v22, %v576_v3 }
 0x223   :  { %v1503_v11 = vpop.eup %1502 }
 0x224   :  { %v1505_v12 = vpop.eup %1504  ;;  %v584_v16 = vadd.f32 1.0, %v1503_v11 }
 0x225   :  { %v604_v36 = vadd.f32 1.0, %v1505_v12 }
 0x226   :  { %1506 = vrcp.f32 %v584_v16  ;;  %v596_v59 = vand.u32 2147483648, %v584_v16  ;;  %v594_v26 = vand.u32 2147483647, %v584_v16  ;;  %vm590_vm3 = vweird.f32 %v584_v16 }
 0x227   :  { %1508 = vrcp.f32 %v604_v36  ;;  %v578_v55 = vpop.f32.mrf.mxu2  ;;  %v616_v4 = vand.u32 2147483648, %v604_v36  ;;  %vm610_vm7 = vweird.f32 %v604_v36  ;;  %v614_v11 = vand.u32 2147483647, %v604_v36 }
 0x228   :  { %v597_v62 = vor.u32 1.1754944e-38, %v596_v59  ;;  %vm595_vm5 = vcmp.eq.f32.partialorder %v594_v26, 8.507059e+37 }
 0x229   :  { %vm615_vm9 = vcmp.eq.f32.partialorder %v614_v11, 8.507059e+37 }
 0x22c   :  { %v1507_v28 = vpop.eup %1506 }
 0x22d   :  { %v1509_v10 = vpop.eup %1508  ;;  %v586_v56 = vmul.f32 %v1507_v28, %v584_v16  ;;  %vm591_vm2 = vweird.f32 %v1507_v28  ;;  %v617_v16 = vor.u32 1.1754944e-38, %v616_v4 }
 0x22e   :  { %v606_v54 = vmul.f32 %v1509_v10, %v604_v36  ;;  %vm592_vm4 = vmor %vm590_vm3, %vm591_vm2  ;;  %vm611_vm6 = vweird.f32 %v1509_v10 }
 0x22f   :  { %v587_v38 = vsub.f32 1.0, %v586_v56  ;;  %vm612_vm8 = vmor %vm610_vm7, %vm611_vm6 }
 0x230   :  { %v607_v21 = vsub.f32 1.0, %v606_v54 }
 0x231   :  { %v588_v1 = vmul.f32 %v1507_v28, %v587_v38 }
 0x232   :  { %v608_v31 = vmul.f32 %v1509_v10, %v607_v21 }
 0x233   :  { %v589_v58 = vadd.f32 %v1507_v28, %v588_v1 }
 0x234   :  { %v609_v19 = vadd.f32 %v1509_v10, %v608_v31 }
 0x235   :  { %v593_v17 = vsel %vm592_vm4, %v1507_v28, %v589_v58 }
 0x236   :  { %v598_v49 = vsel %vm595_vm5, %v597_v62, %v593_v17  ;;  %v613_v55 = vsel %vm612_vm8, %v1509_v10, %v609_v19 }
 0x237   :  { %v621_v8 = vmul.f32 %v620_v48, %v598_v49  ;;  %v618_v28 = vsel %vm615_vm9, %v617_v16, %v613_v55 }
 0x238   :  { %v624_v56 = vsub.f32 1.0, %v618_v28  ;;  %v626_v38 = vmul.f32 %v618_v28, %v2055_v57  ;;  %v158_v57 = vadd.f32 %v2030_v32, %v1984_v61 }
 0x239   :  { %v622_v12 = vadd.f32 %v621_v8, %v185_v2 }
 0x23b   :  { %1510 = vtanh.f32 %v622_v12 }
 0x241   :  { %v1511_v54 = vpop.eup %1510 }
 0x242   :  { %v625_v3 = vmul.f32 %v1511_v54, %v624_v56 }
 0x244   :  { %v2090_v21 = vadd.f32 %v626_v38, %v625_v3 }
 0x246   :  { %v628_v30 = vpack.c.bf16 %v2090_v21, %v2090_v21 }
 0x248   :  { %637 = vmatmul.bf16.vlgmr.msrb.gmra.mxu3 %v628_v30  ;;  %650 = vmatmul.bf16.vlgmr.msrb.gmra.mxu0 %v628_v30 }
 0x249   :  { %663 = vmatmul.bf16.vlgmr.msrb.gmra.mxu1 %v628_v30  ;;  %831 = vmatpush.bf16.msrb.mxu3 %v1671_v14 }
 0x24a   :  { %893 = vmatpush.bf16.msrb.mxu0 %v1644_v6  ;;  %906 = vmatpush.bf16.msrb.mxu1 %v1788_v52 }
 0x24d   :  { %832 = vmatpush.bf16.msrb.mxu3 %v1689_v20 }
 0x24e   :  { %894 = vmatpush.bf16.msrb.mxu0 %v1655_v9  ;;  %907 = vmatpush.bf16.msrb.mxu1 %v1820_v63 }
 0x251   :  { %833 = vmatpush.bf16.msrb.mxu3 %v1701_v24 }
 0x252   :  { %895 = vmatpush.bf16.msrb.mxu0 %v1674_v15  ;;  %908 = vmatpush.bf16.msrb.mxu1 %v1842_v5 }
 0x255   :  { %834 = vmatpush.bf16.msrb.mxu3 %v1730_v33 }
 0x256   :  { %896 = vmatpush.bf16.msrb.mxu0 %v1698_v23  ;;  %909 = vmatpush.bf16.msrb.mxu1 %v1857_v7 }
 0x259   :  { %835 = vmatpush.bf16.msrb.mxu3 %v1750_v39 }
 0x25a   :  { %897 = vmatpush.bf16.msrb.mxu0 %v1710_v27  ;;  %910 = vmatpush.bf16.msrb.mxu1 %v1871_v13 }
 0x25d   :  { %836 = vmatpush.bf16.msrb.mxu3 %v1780_v50 }
 0x25e   :  { %898 = vmatpush.bf16.msrb.mxu0 %v1733_v34  ;;  %911 = vmatpush.bf16.msrb.mxu1 %v1883_v18 }
 0x261   :  { %837 = vmatpush.bf16.msrb.mxu3 %v1810_v60 }
 0x262   :  { %899 = vmatpush.bf16.msrb.mxu0 %v1759_v43  ;;  %912 = vmatpush.bf16.msrb.mxu1 %v1900_v25 }
 0x265   :  { %838 = vmatpush.bf16.msrb.mxu3 %v1823_v0 }
 0x266   :  { %900 = vmatpush.bf16.msrb.mxu0 %v1784_v51  ;;  %913 = vmatpush.bf16.msrb.mxu1 %v1914_v29 }
 0x2c5   :  { %v651_v36 = vpop.f32.mrf.mxu0 }
 0x2c6   :  { %v688_v10 = vadd.f32 %v651_v36, %v158_v57  ;;  %v664_v59 = vpop.f32.mrf.mxu1 }
 0x2c7   :  { %v708_v30 = vadd.f32 %v1992_v22, %v664_v59 }
 0x2c8   :  { %v1417_v1 = vmul.f32 -1.442695, %v688_v10 }
 0x2ca   :  { %1512 = vpow2.f32 %v1417_v1  ;;  %v187_v1 = vadd.f32 %v2032_v35, %v1995_v42 }
 0x2cb   :  { %v638_v26 = vpop.f32.mrf.mxu3 }
 0x2cc   :  { %v668_v31 = vadd.f32 %v638_v26, %v1976_v41 }
 0x2cd   :  { %v653_v58 = vpop.f32.mrf.mxu0 }
 0x2ce   :  { %v1416_v62 = vmul.f32 -1.442695, %v668_v31  ;;  %v666_v17 = vpop.f32.mrf.mxu1 }
 0x2d0   :  { %v1513_v48 = vpop.eup %1512  ;;  %1514 = vpow2.f32 %v1416_v62 }
 0x2d1   :  { %v692_v49 = vadd.f32 1.0, %v1513_v48 }
 0x2d3   :  { %v640_v19 = vpop.f32.mrf.mxu3  ;;  %1516 = vrcp.f32 %v692_v49  ;;  %v704_v26 = vand.u32 2147483648, %v692_v49  ;;  %vm698_vm15 = vweird.f32 %v692_v49  ;;  %v702_v58 = vand.u32 2147483647, %v692_v49 }
 0x2d5   :  { %v705_v48 = vor.u32 1.1754944e-38, %v704_v26  ;;  %vm703_vm2 = vcmp.eq.f32.partialorder %v702_v58, 8.507059e+37 }
 0x2d6   :  { %v1515_v2 = vpop.eup %1514 }
 0x2d7   :  { %v672_v4 = vadd.f32 1.0, %v1515_v2 }
 0x2d9   :  { %1518 = vrcp.f32 %v672_v4  ;;  %v1517_v32 = vpop.eup %1516  ;;  %v684_v28 = vand.u32 2147483648, %v672_v4  ;;  %v682_v41 = vand.u32 2147483647, %v672_v4  ;;  %vm678_vm11 = vweird.f32 %v672_v4 }
 0x2da   :  { %v694_v8 = vmul.f32 %v1517_v32, %v692_v49  ;;  %vm699_vm14 = vweird.f32 %v1517_v32 }
 0x2db   :  { %v685_v38 = vor.u32 1.1754944e-38, %v684_v28  ;;  %vm683_vm13 = vcmp.eq.f32.partialorder %v682_v41, 8.507059e+37  ;;  %vm700_vm1 = vmor %vm698_vm15, %vm699_vm14 }
 0x2dc   :  { %v695_v55 = vsub.f32 1.0, %v694_v8 }
 0x2de   :  { %v696_v54 = vmul.f32 %v1517_v32, %v695_v55 }
 0x2df   :  { %v1519_v11 = vpop.eup %1518 }
 0x2e0   :  { %v674_v12 = vmul.f32 %v1519_v11, %v672_v4  ;;  %vm679_vm10 = vweird.f32 %v1519_v11  ;;  %v697_v10 = vadd.f32 %v1517_v32, %v696_v54 }
 0x2e1   :  { %vm680_vm12 = vmor %vm678_vm11, %vm679_vm10 }
 0x2e2   :  { %v675_v16 = vsub.f32 1.0, %v674_v12  ;;  %v701_v17 = vsel %vm700_vm1, %v1517_v32, %v697_v10 }
 0x2e3   :  { %v706_v19 = vsel %vm703_vm2, %v705_v48, %v701_v17 }
 0x2e4   :  { %v676_v56 = vmul.f32 %v1519_v11, %v675_v16  ;;  %v712_v59 = vsub.f32 1.0, %v706_v19  ;;  %v714_v8 = vmul.f32 %v706_v19, %v2090_v21 }
 0x2e6   :  { %v677_v3 = vadd.f32 %v1519_v11, %v676_v56 }
 0x2e8   :  { %v681_v57 = vsel %vm680_vm12, %v1519_v11, %v677_v3 }
 0x2e9   :  { %v686_v36 = vsel %vm683_vm13, %v685_v38, %v681_v57  ;;  %v190_v57 = vadd.f32 %v2036_v40, %v1995_v42 }
 0x2ea   :  { %v709_v31 = vmul.f32 %v708_v30, %v686_v36 }
 0x2ec   :  { %v710_v62 = vadd.f32 %v709_v31, %v187_v1 }
 0x2ee   :  { %1520 = vtanh.f32 %v710_v62 }
 0x2f4   :  { %v1521_v2 = vpop.eup %1520 }
 0x2f5   :  { %v713_v4 = vmul.f32 %v1521_v2, %v712_v59 }
 0x2f7   :  { %v2125_v11 = vadd.f32 %v714_v8, %v713_v4 }
 0x2f9   :  { %v716_v35 = vpack.c.bf16 %v2125_v11, %v2125_v11 }
 0x2fb   :  { %725 = vmatmul.bf16.vlgmr.msrb.gmra.mxu2 %v716_v35  ;;  %738 = vmatmul.bf16.vlgmr.msra.gmra.mxu3 %v716_v35 }
 0x2fc   :  { %751 = vmatmul.bf16.vlgmr.msra.gmra.mxu0 %v716_v35  ;;  %919 = vmatpush.bf16.msrb.mxu2 %v1671_v14 }
 0x2fd   :  { %981 = vmatpush.bf16.msra.mxu3 %v1644_v6  ;;  %994 = vmatpush.bf16.msra.mxu0 %v1788_v52 }
 0x300   :  { %920 = vmatpush.bf16.msrb.mxu2 %v1689_v20 }
 0x301   :  { %982 = vmatpush.bf16.msra.mxu3 %v1655_v9  ;;  %995 = vmatpush.bf16.msra.mxu0 %v1820_v63  ;;  %v161_v9 = vadd.f32 %v2034_v37, %v1984_v61 }
 0x304   :  { %921 = vmatpush.bf16.msrb.mxu2 %v1701_v24 }
 0x305   :  { %983 = vmatpush.bf16.msra.mxu3 %v1674_v15  ;;  %996 = vmatpush.bf16.msra.mxu0 %v1842_v5 }
 0x308   :  { %922 = vmatpush.bf16.msrb.mxu2 %v1730_v33 }
 0x309   :  { %984 = vmatpush.bf16.msra.mxu3 %v1698_v23  ;;  %997 = vmatpush.bf16.msra.mxu0 %v1857_v7 }
 0x30c   :  { %923 = vmatpush.bf16.msrb.mxu2 %v1750_v39 }
 0x30d   :  { %985 = vmatpush.bf16.msra.mxu3 %v1710_v27  ;;  %998 = vmatpush.bf16.msra.mxu0 %v1871_v13 }
 0x310   :  { %924 = vmatpush.bf16.msrb.mxu2 %v1780_v50 }
 0x311   :  { %986 = vmatpush.bf16.msra.mxu3 %v1733_v34  ;;  %999 = vmatpush.bf16.msra.mxu0 %v1883_v18 }
 0x314   :  { %925 = vmatpush.bf16.msrb.mxu2 %v1810_v60 }
 0x315   :  { %987 = vmatpush.bf16.msra.mxu3 %v1759_v43  ;;  %1000 = vmatpush.bf16.msra.mxu0 %v1900_v25 }
 0x318   :  { %926 = vmatpush.bf16.msrb.mxu2 %v1823_v0 }
 0x319   :  { %988 = vmatpush.bf16.msra.mxu3 %v1784_v51  ;;  %1001 = vmatpush.bf16.msra.mxu0 %v1914_v29 }
 0x379   :  { %v752_v6 = vpop.f32.mrf.mxu0 }
 0x37a   :  { %v796_v54 = vadd.f32 %v1992_v22, %v752_v6 }
 0x37e   :  { %v726_v15 = vpop.f32.mrf.mxu2  ;;  %v739_v23 = vpop.f32.mrf.mxu3 }
 0x37f   :  { %v756_v27 = vadd.f32 %v726_v15, %v1978_v44  ;;  %v776_v34 = vadd.f32 %v739_v23, %v161_v9 }
 0x381   :  { %v1418_v52 = vmul.f32 -1.442695, %v756_v27  ;;  %v1419_v63 = vmul.f32 -1.442695, %v776_v34  ;;  %v754_v43 = vpop.f32.mrf.mxu0 }
 0x383   :  { %1522 = vpow2.f32 %v1418_v52 }
 0x384   :  { %1524 = vpow2.f32 %v1419_v63 }
 0x386   :  { %v728_v5 = vpop.f32.mrf.mxu2  ;;  %v741_v7 = vpop.f32.mrf.mxu3 }
 0x389   :  { %v1523_v13 = vpop.eup %1522 }
 0x38a   :  { %v1525_v51 = vpop.eup %1524  ;;  %v760_v18 = vadd.f32 1.0, %v1523_v13 }
 0x38b   :  { %v780_v25 = vadd.f32 1.0, %v1525_v51 }
 0x38c   :  { %1526 = vrcp.f32 %v760_v18  ;;  %v772_v44 = vand.u32 2147483648, %v760_v18  ;;  %v770_v16 = vand.u32 2147483647, %v760_v18  ;;  %vm766_vm4 = vweird.f32 %v760_v18 }
 0x38d   :  { %1528 = vrcp.f32 %v780_v25  ;;  %v792_v10 = vand.u32 2147483648, %v780_v25  ;;  %vm786_vm8 = vweird.f32 %v780_v25  ;;  %v790_v1 = vand.u32 2147483647, %v780_v25 }
 0x38e   :  { %v773_v41 = vor.u32 1.1754944e-38, %v772_v44  ;;  %vm771_vm6 = vcmp.eq.f32.partialorder %v770_v16, 8.507059e+37 }
 0x38f   :  { %v793_v58 = vor.u32 1.1754944e-38, %v792_v10  ;;  %vm791_vm10 = vcmp.eq.f32.partialorder %v790_v1, 8.507059e+37  ;;  %v166_v10 = vadd.f32 %v2042_v47, %v1984_v61 }
 0x392   :  { %v1527_v29 = vpop.eup %1526 }
 0x393   :  { %v1529_v37 = vpop.eup %1528  ;;  %v762_v21 = vmul.f32 %v1527_v29, %v760_v18  ;;  %vm767_vm3 = vweird.f32 %v1527_v29 }
 0x394   :  { %v782_v49 = vmul.f32 %v1529_v37, %v780_v25  ;;  %vm768_vm5 = vmor %vm766_vm4, %vm767_vm3  ;;  %vm787_vm7 = vweird.f32 %v1529_v37  ;;  %v192_v25 = vadd.f32 %v2040_v46, %v1995_v42 }
 0x395   :  { %v763_v32 = vsub.f32 1.0, %v762_v21  ;;  %vm788_vm9 = vmor %vm786_vm8, %vm787_vm7 }
 0x396   :  { %v783_v12 = vsub.f32 1.0, %v782_v49 }
 0x397   :  { %v764_v55 = vmul.f32 %v1527_v29, %v763_v32 }
 0x398   :  { %v784_v28 = vmul.f32 %v1529_v37, %v783_v12 }
 0x399   :  { %v765_v56 = vadd.f32 %v1527_v29, %v764_v55 }
 0x39a   :  { %v785_v30 = vadd.f32 %v1529_v37, %v784_v28 }
 0x39b   :  { %v769_v3 = vsel %vm768_vm5, %v1527_v29, %v765_v56 }
 0x39c   :  { %v774_v38 = vsel %vm771_vm6, %v773_v41, %v769_v3  ;;  %v789_v31 = vsel %vm788_vm9, %v1529_v37, %v785_v30  ;;  %v1476_v30 = vld [vmem:[%s2397_s5 + $0x8] sm:$0xf0] }
 0x39d   :  { %v797_v36 = vmul.f32 %v796_v54, %v774_v38  ;;  %v794_v62 = vsel %vm791_vm10, %v793_v58, %v789_v31  ;;  %v1429_v38 = vld [vmem:[%s2397_s5] sm:$0xf] }
 0x39e   :  { %v800_v17 = vsub.f32 1.0, %v794_v62  ;;  %v802_v59 = vmul.f32 %v794_v62, %v2125_v11  ;;  %v2408_v31 = vld [vmem:[#allocation4_spill] sm:$0xff] }
 0x39f   :  { %v798_v26 = vadd.f32 %v797_v36, %v190_v57  ;;  %v1430_v57 = vor.u32 %v1476_v30, %v1429_v38  ;;  %v2192_v36 = vld [vmem:[%s2394_s0 + $0x1c] sm:$0xf] }
 0x3a1   :  { %1530 = vtanh.f32 %v798_v26 }
 0x3a7   :  { %v1531_v48 = vpop.eup %1530 }
 0x3a8   :  { %v801_v19 = vmul.f32 %v1531_v48, %v800_v17 }
 0x3aa   :  { %v2160_v2 = vadd.f32 %v802_v59, %v801_v19  ;;  %v1475_v19 = vld [vmem:[%s2397_s5 + $0x4] sm:$0xf]  ;;  %v1431_v59 = vld [vmem:[%s2397_s5 + $0xc] sm:$0xf0] }
 0x3ac   :  { %v804_v40 = vpack.c.bf16 %v2160_v2, %v2160_v2 }
 0x3ae   :  { %813 = vmatmul.bf16.vlgmr.msra.gmra.mxu1 %v804_v40  ;;  %826 = vmatmul.bf16.vlgmr.msra.gmra.mxu2 %v804_v40 }
 0x3af   :  { %839 = vmatmul.bf16.vlgmr.msrb.gmra.mxu3 %v804_v40  ;;  %1007 = vmatpush.bf16.msra.mxu1 %v1671_v14  ;;  %v163_v14 = vadd.f32 %v2038_v45, %v1984_v61 }
 0x3b0   :  { %1112 = vmatpush.bf16.msra.mxu2 %v1430_v57  ;;  %v1222_v57 = vld [vmem:[%s2400_s8 + $0xf8] sm:$0xff] }
 0x3b3   :  { %1008 = vmatpush.bf16.msra.mxu1 %v1689_v20 }
 0x3b7   :  { %1009 = vmatpush.bf16.msra.mxu1 %v1701_v24 }
 0x3bb   :  { %1010 = vmatpush.bf16.msra.mxu1 %v1730_v33 }
 0x3bf   :  { %1011 = vmatpush.bf16.msra.mxu1 %v1750_v39 }
 0x3c3   :  { %1012 = vmatpush.bf16.msra.mxu1 %v1780_v50 }
 0x3c7   :  { %1013 = vmatpush.bf16.msra.mxu1 %v1810_v60 }
 0x3cb   :  { %1014 = vmatpush.bf16.msra.mxu1 %v1823_v0 }
 0x42b   :  { %v814_v4 = vpop.f32.mrf.mxu1 }
 0x42c   :  { %v844_v8 = vadd.f32 %v814_v4, %v1980_v53 }
 0x42e   :  { %v1420_v11 = vmul.f32 -1.442695, %v844_v8 }
 0x430   :  { %1532 = vpow2.f32 %v1420_v11 }
 0x431   :  { %v827_v20 = vpop.f32.mrf.mxu2 }
 0x432   :  { %v864_v24 = vadd.f32 %v827_v20, %v163_v14  ;;  %v840_v35 = vpop.f32.mrf.mxu3 }
 0x433   :  { %v816_v33 = vpop.f32.mrf.mxu1  ;;  %v884_v18 = vadd.f32 %v1992_v22, %v840_v35  ;;  %v1437_v35 = vld [vmem:[%s2397_s5 + $0x8] sm:$0xf] }
 0x434   :  { %v1421_v6 = vmul.f32 -1.442695, %v864_v24  ;;  %v1477_v33 = vld [vmem:[%s2397_s5 + $0x10] sm:$0xf0] }
 0x436   :  { %v1533_v39 = vpop.eup %1532  ;;  %1534 = vpow2.f32 %v1421_v6  ;;  %v1438_v6 = vor.u32 %v1477_v33, %v1437_v35  ;;  %v1204_v35 = vld [vmem:[%s2400_s8 + $0x68] sm:$0xff] }
 0x437   :  { %v848_v50 = vadd.f32 1.0, %v1533_v39 }
 0x438   :  { %1138 = vmatpush.bf16.msrb.mxu3 %v1438_v6  ;;  %v1211_v6 = vld [vmem:[%s2400_s8 + $0xa0] sm:$0xff] }
 0x439   :  { %1536 = vrcp.f32 %v848_v50  ;;  %v829_v60 = vpop.f32.mrf.mxu2  ;;  %v860_v34 = vand.u32 2147483648, %v848_v50  ;;  %v858_v52 = vand.u32 2147483647, %v848_v50  ;;  %vm854_vm12 = vweird.f32 %v848_v50 }
 0x43a   :  { %v842_v9 = vpop.f32.mrf.mxu3 }
 0x43b   :  { %v861_v7 = vor.u32 1.1754944e-38, %v860_v34  ;;  %vm859_vm14 = vcmp.eq.f32.partialorder %v858_v52, 8.507059e+37 }
 0x43c   :  { %v1535_v0 = vpop.eup %1534 }
 0x43d   :  { %v868_v15 = vadd.f32 1.0, %v1535_v0 }
 0x43f   :  { %v1537_v23 = vpop.eup %1536  ;;  %1538 = vrcp.f32 %v868_v15  ;;  %v880_v21 = vand.u32 2147483648, %v868_v15  ;;  %v878_v32 = vand.u32 2147483647, %v868_v15  ;;  %vm874_vm1 = vweird.f32 %v868_v15 }
 0x440   :  { %v850_v53 = vmul.f32 %v1537_v23, %v848_v50  ;;  %vm855_vm11 = vweird.f32 %v1537_v23 }
 0x441   :  { %vm856_vm13 = vmor %vm854_vm12, %vm855_vm11  ;;  %v881_v55 = vor.u32 1.1754944e-38, %v880_v21  ;;  %vm879_vm3 = vcmp.eq.f32.partialorder %v878_v32, 8.507059e+37 }
 0x442   :  { %v851_v27 = vsub.f32 1.0, %v850_v53 }
 0x444   :  { %v852_v45 = vmul.f32 %v1537_v23, %v851_v27 }
 0x445   :  { %v1539_v63 = vpop.eup %1538 }
 0x446   :  { %v870_v43 = vmul.f32 %v1539_v63, %v868_v15  ;;  %v853_v5 = vadd.f32 %v1537_v23, %v852_v45  ;;  %vm875_vm15 = vweird.f32 %v1539_v63 }
 0x447   :  { %vm876_vm2 = vmor %vm874_vm1, %vm875_vm15 }
 0x448   :  { %v871_v13 = vsub.f32 1.0, %v870_v43  ;;  %v857_v51 = vsel %vm856_vm13, %v1537_v23, %v853_v5  ;;  %v2216_v43 = vld [vmem:[%s2395_s4] ss:$0 sm:$0xff] }
 0x449   :  { %v862_v29 = vsel %vm859_vm14, %v861_v7, %v857_v51  ;;  %v2409_v51 = vld [vmem:[#allocation6_spill] sm:$0xff] }
 0x44a   :  { %v872_v37 = vmul.f32 %v1539_v63, %v871_v13  ;;  %v885_v49 = vmul.f32 %v884_v18, %v862_v29  ;;  %v195_v18 = vadd.f32 %v2409_v51, %v1995_v42  ;;  %v1198_v51 = vld [vmem:[%s2400_s8 + $0x38] sm:$0xff] }
 0x44c   :  { %v886_v44 = vadd.f32 %v885_v49, %v192_v25  ;;  %v873_v12 = vadd.f32 %v1539_v63, %v872_v37 }
 0x44e   :  { %1540 = vtanh.f32 %v886_v44  ;;  %v877_v16 = vsel %vm876_vm2, %v1539_v63, %v873_v12 }
 0x44f   :  { %v882_v28 = vsel %vm879_vm3, %v881_v55, %v877_v16 }
 0x450   :  { %v888_v56 = vsub.f32 1.0, %v882_v28  ;;  %v890_v46 = vmul.f32 %v882_v28, %v2160_v2  ;;  %v1434_v2 = vor.u32 %v1475_v19, %v1431_v59  ;;  %v1217_v19 = vld [vmem:[%s2400_s8 + $0xd0] sm:$0xff] }
 0x454   :  { %v1541_v22 = vpop.eup %1540 }
 0x455   :  { %v889_v41 = vmul.f32 %v1541_v22, %v888_v56 }
 0x457   :  { %v2179_v54 = vadd.f32 %v890_v46, %v889_v41 }
 0x459   :  { %v892_v3 = vpack.c.bf16 %v2179_v54, %v2179_v54 }
 0x45b   :  { %901 = vmatmul.bf16.vlgmr.msrb.gmra.mxu0 %v892_v3  ;;  %914 = vmatmul.bf16.vlgmr.msrb.gmra.mxu1 %v892_v3 }
 0x45c   :  { %927 = vmatmul.bf16.vlgmr.msrb.gmra.mxu2 %v892_v3  ;;  %v2231_v3 = vld [vmem:[%s2399_s6] sm:$0x7]  ;;  %1223 = vmatpush.msrb.mxu0 %v1222_v57 }
 0x45d   :  { %1125 = vmatpush.bf16.msrb.mxu2 %v1434_v2  ;;  %v1216_v2 = vld [vmem:[%s2400_s8 + $0xc8] sm:$0xff] }
 0x46c   :  { %1439 = vmatmul.msk.bf16.vlgmr.msra.gmra.mxu2 %vm99_vm0, %v2192_v36 }
 0x47c   :  { %1440 = vmatmul.msk.bf16.vlgmr.msrb.gmra.mxu2 %vm99_vm0, %v2192_v36 }
 0x4d8   :  { %v902_v1 = vpop.f32.mrf.mxu0  ;;  %v915_v26 = vpop.f32.mrf.mxu1 }
 0x4d9   :  { %v932_v58 = vadd.f32 %v902_v1, %v2408_v31  ;;  %v952_v62 = vadd.f32 %v915_v26, %v166_v10  ;;  %v1081_v10 = vperm.slane %v2231_v3, 1  ;;  %v1220_v26 = vld [vmem:[%s2400_s8 + $0xe8] sm:$0xff] }
 0x4db   :  { %v1422_v17 = vmul.f32 -1.442695, %v932_v58  ;;  %v1423_v48 = vmul.f32 -1.442695, %v952_v62  ;;  %v1219_v62 = vld [vmem:[%s2400_s8 + $0xe0] sm:$0xff] }
 0x4dd   :  { %1542 = vpow2.f32 %v1422_v17  ;;  %v1218_v17 = vld [vmem:[%s2400_s8 + $0xd8] sm:$0xff] }
 0x4de   :  { %1544 = vpow2.f32 %v1423_v48 }
 0x4df   :  { %v928_v40 = vpop.f32.mrf.mxu2 }
 0x4e0   :  { %v904_v47 = vpop.f32.mrf.mxu0  ;;  %v917_v4 = vpop.f32.mrf.mxu1  ;;  %v972_v5 = vadd.f32 %v2216_v43, %v928_v40  ;;  %v1215_v40 = vld [vmem:[%s2400_s8 + $0xc0] sm:$0xff] }
 0x4e1   :  { %v1214_v4 = vld [vmem:[%s2400_s8 + $0xb8] sm:$0xff] }
 0x4e3   :  { %v1543_v8 = vpop.eup %1542 }
 0x4e4   :  { %v1545_v11 = vpop.eup %1544  ;;  %v936_v14 = vadd.f32 1.0, %v1543_v8  ;;  %v1206_v8 = vld [vmem:[%s2400_s8 + $0x78] sm:$0xff] }
 0x4e5   :  { %v956_v20 = vadd.f32 1.0, %v1545_v11  ;;  %1243 = vmatpush.msrb.mxu1 %v1206_v8  ;;  %v1213_v11 = vld [vmem:[%s2400_s8 + $0xb0] sm:$0xff] }
 0x4e6   :  { %1546 = vrcp.f32 %v936_v14  ;;  %v948_v23 = vand.u32 2147483648, %v936_v14  ;;  %v946_v27 = vand.u32 2147483647, %v936_v14  ;;  %vm942_vm5 = vweird.f32 %v936_v14 }
 0x4e7   :  { %1548 = vrcp.f32 %v956_v20  ;;  %v930_v24 = vpop.f32.mrf.mxu2  ;;  %v968_v25 = vand.u32 2147483648, %v956_v20  ;;  %vm962_vm9 = vweird.f32 %v956_v20  ;;  %v966_v37 = vand.u32 2147483647, %v956_v20 }
 0x4e8   :  { %v949_v52 = vor.u32 1.1754944e-38, %v948_v23  ;;  %vm947_vm7 = vcmp.eq.f32.partialorder %v946_v27, 8.507059e+37  ;;  %v1212_v24 = vld [vmem:[%s2400_s8 + $0xa8] sm:$0xff]  ;;  %v1209_v23 = vld [vmem:[%s2400_s8 + $0x90] sm:$0xff] }
 0x4e9   :  { %v969_v32 = vor.u32 1.1754944e-38, %v968_v25  ;;  %vm967_vm11 = vcmp.eq.f32.partialorder %v966_v37, 8.507059e+37 }
 0x4ec   :  { %v1547_v39 = vpop.eup %1546 }
 0x4ed   :  { %v1549_v50 = vpop.eup %1548  ;;  %v938_v60 = vmul.f32 %v1547_v39, %v936_v14  ;;  %vm943_vm4 = vweird.f32 %v1547_v39  ;;  %v1205_v14 = vld [vmem:[%s2400_s8 + $0x70] sm:$0xff] }
 0x4ee   :  { %v958_v9 = vmul.f32 %v1549_v50, %v956_v20  ;;  %vm944_vm6 = vmor %vm942_vm5, %vm943_vm4  ;;  %vm963_vm8 = vweird.f32 %v1549_v50  ;;  %1244 = vmatpush.msrb.mxu1 %v1205_v14 }
 0x4ef   :  { %v939_v0 = vsub.f32 1.0, %v938_v60  ;;  %vm964_vm10 = vmor %vm962_vm9, %vm963_vm8  ;;  %v1114_v41 = vpop.f32.mrf.mxu2  ;;  %v1202_v60 = vld [vmem:[%s2400_s8 + $0x58] sm:$0xff] }
 0x4f0   :  { %v959_v15 = vsub.f32 1.0, %v958_v9  ;;  %1245 = vmatpush.msrb.mxu1 %v1204_v35 }
 0x4f1   :  { %v940_v53 = vmul.f32 %v1547_v39, %v939_v0  ;;  %v2410_v0 = vld [vmem:[#allocation7_spill] sm:$0xff] }
 0x4f2   :  { %v960_v34 = vmul.f32 %v1549_v50, %v959_v15  ;;  %v168_v15 = vadd.f32 %v2410_v0, %v1984_v61  ;;  %v1208_v61 = vld [vmem:[%s2400_s8 + $0x88] sm:$0xff] }
 0x4f3   :  { %v941_v45 = vadd.f32 %v1547_v39, %v940_v53  ;;  %v1201_v53 = vld [vmem:[%s2400_s8 + $0x50] sm:$0xff] }
 0x4f4   :  { %v961_v13 = vadd.f32 %v1549_v50, %v960_v34 }
 0x4f5   :  { %v945_v63 = vsel %vm944_vm6, %v1547_v39, %v941_v45  ;;  %v1203_v39 = vld [vmem:[%s2400_s8 + $0x60] sm:$0xff] }
 0x4f6   :  { %v950_v7 = vsel %vm947_vm7, %v949_v52, %v945_v63  ;;  %v965_v49 = vsel %vm964_vm10, %v1549_v50, %v961_v13  ;;  %1246 = vmatpush.msrb.mxu1 %v1203_v39  ;;  %v1210_v50 = vld [vmem:[%s2400_s8 + $0x98] sm:$0xff]  ;;  %v1200_v63 = vld [vmem:[%s2400_s8 + $0x48] sm:$0xff]  ;;  %v1199_v13 = vld [vmem:[%s2400_s8 + $0x40] sm:$0xff] }
 0x4f7   :  { %v973_v29 = vmul.f32 %v972_v5, %v950_v7  ;;  %v970_v44 = vsel %vm967_vm11, %v969_v32, %v965_v49  ;;  %v1116_v46 = vpop.f32.mrf.mxu2  ;;  %v1207_v7 = vld [vmem:[%s2400_s8 + $0x80] sm:$0xff]  ;;  %v1196_v32 = vld [vmem:[%s2400_s8 + $0x28] sm:$0xff] }
 0x4f8   :  { %v976_v12 = vsub.f32 1.0, %v970_v44  ;;  %v978_v28 = vmul.f32 %v970_v44, %v2179_v54  ;;  %v1080_v54 = vperm.slane %v2231_v3, 0  ;;  %1247 = vmatpush.msrb.mxu1 %v1202_v60  ;;  %v1194_v46 = vld [vmem:[%s2400_s8 + $0x18] sm:$0xff] }
 0x4f9   :  { %v974_v21 = vadd.f32 %v973_v29, %v195_v18  ;;  %v1197_v29 = vld [vmem:[%s2400_s8 + $0x30] sm:$0xff] }
 0x4fa   :  { %v1115_v30 = vadd.f32 %v1114_v41, %v1080_v54  ;;  %1248 = vmatpush.msrb.mxu1 %v1201_v53 }
 0x4fb   :  { %1550 = vtanh.f32 %v974_v21  ;;  %v2411_v21 = vld [vmem:[#allocation5_spill] sm:$0xff] }
 0x4fc   :  { %v1442_v1 = vmul.f32 -1.442695, %v1115_v30  ;;  %1249 = vmatpush.msrb.mxu1 %v1200_v63 }
 0x4fe   :  { %1552 = vpow2.f32 %v1442_v1  ;;  %1250 = vmatpush.msrb.mxu1 %v1199_v13  ;;  %v1193_v1 = vld [vmem:[%s2400_s8 + $0x10] sm:$0xff] }
 0x4ff   :  { %v1127_v38 = vpop.f32.mrf.mxu2 }
 0x500   :  { %v1128_v31 = vadd.f32 %v1127_v38, %v1081_v10  ;;  %1251 = vmatpush.msrb.mxu1 %v1198_v51 }
 0x501   :  { %v1551_v55 = vpop.eup %1550 }
 0x502   :  { %v977_v16 = vmul.f32 %v1551_v55, %v976_v12  ;;  %v1443_v48 = vmul.f32 -1.442695, %v1128_v31  ;;  %1252 = vmatpush.msrb.mxu1 %v1197_v29  ;;  %v1192_v31 = vld [vmem:[%s2400_s8 + $0x8] sm:$0xff] }
 0x504   :  { %v2222_v56 = vadd.f32 %v978_v28, %v977_v16  ;;  %v1553_v59 = vpop.eup %1552  ;;  %1554 = vpow2.f32 %v1443_v48  ;;  %1253 = vmatpush.msrb.mxu1 %v1196_v32 }
 0x505   :  { %v2259_v47 = vadd.f32 1.0, %v1553_v59 }
 0x506   :  { %v980_v22 = vpack.c.bf16 %v2222_v56, %v2222_v56 }
 0x507   :  { %v1129_v58 = vpop.f32.mrf.mxu2  ;;  %1556 = vrcp.f32 %v2259_v47  ;;  %v1159_v30 = vand.u32 2147483648, %v2259_v47  ;;  %v1157_v10 = vand.u32 2147483647, %v2259_v47 }
 0x508   :  { %989 = vmatmul.bf16.vlgmr.msra.gmra.mxu3 %v980_v22  ;;  %1002 = vmatmul.bf16.vlgmr.msra.gmra.mxu0 %v980_v22 }
 0x509   :  { %1015 = vmatmul.bf16.vlgmr.msra.gmra.mxu1 %v980_v22  ;;  %v1195_v22 = vld [vmem:[%s2400_s8 + $0x20] sm:$0xff]  ;;  %vm1158_vm14 = vcmp.eq.f32.partialorder %v1157_v10, 8.507059e+37 }
 0x50a   :  { %v1555_v20 = vpop.eup %1554  ;;  %1254 = vmatpush.msrb.mxu1 %v1195_v22 }
 0x50b   :  { %v2280_v33 = vadd.f32 1.0, %v1555_v20 }
 0x50c   :  { %1255 = vmatpush.msrb.mxu1 %v1194_v46  ;;  %v15_v46 = vstv %s2401_s9 }
 0x50d   :  { %v2294_v9 = vpop.eup %1556  ;;  %1558 = vrcp.f32 %v2280_v33  ;;  %vm1172_vm15 = vweird.f32 %v2280_v33  ;;  %16 = vst [vmem:[#allocation3] sm:$0x1] %v15_v46 }
 0x50e   :  { %v1149_v34 = vmul.f32 %v2294_v9, %v2259_v47  ;;  %vm1154_vm12 = vweird.f32 %v2294_v9  ;;  %1256 = vmatpush.msrb.mxu1 %v1193_v1 }
 0x510   :  { %v1150_v25 = vsub.f32 1.0, %v1149_v34  ;;  %1257 = vmatpush.msrb.mxu1 %v1192_v31 }
 0x512   :  { %v1151_v28 = vmul.f32 %v2294_v9, %v1150_v25 }
 0x513   :  { %v2324_v18 = vpop.eup %1558 }
 0x514   :  { %v1168_v44 = vmul.f32 %v2324_v18, %v2280_v33  ;;  %v1152_v57 = vadd.f32 %v2294_v9, %v1151_v28  ;;  %vm1173_vm1 = vweird.f32 %v2324_v18 }
 0x515   :  { %vm1174_vm2 = vmor %vm1172_vm15, %vm1173_vm1 }
 0x516   :  { %v1169_v38 = vsub.f32 1.0, %v1168_v44 }
 0x518   :  { %1441 = vmatmul.msk.bf16.vlgmr.msrb.gmra.mxu3 %vm99_vm0, %v2192_v36  ;;  %v1221_v36 = vld [vmem:[%s2400_s8 + $0xf0] sm:$0xff]  ;;  %vm1153_vm0 = vweird.f32 %v2259_v47  ;;  %v1170_v58 = vmul.f32 %v2324_v18, %v1169_v38  ;;  %v1178_v47 = vand.u32 2147483648, %v2280_v33 }
 0x519   :  { %1224 = vmatpush.msrb.mxu0 %v1221_v36  ;;  %vm2352_vm13 = vmor %vm1153_vm0, %vm1154_vm12  ;;  %vm1268_vm0 = vcmask 7168  }
 0x51a   :  { %v1156_v48 = vsel %vm2352_vm13, %v2294_v9, %v1152_v57  ;;  %v1171_v8 = vadd.f32 %v2324_v18, %v1170_v58 }
 0x51b   :  { %1225 = vmatpush.msrb.mxu0 %v1220_v26 }
 0x51c   :  { %v1175_v39 = vsel %vm1174_vm2, %v2324_v18, %v1171_v8 }
 0x51d   :  { %1226 = vmatpush.msrb.mxu0 %v1219_v62  ;;  %v1160_v62 = vor.u32 1.1754944e-38, %v1159_v30 }
 0x51f   :  { %1227 = vmatpush.msrb.mxu0 %v1218_v17 }
 0x521   :  { %1228 = vmatpush.msrb.mxu0 %v1217_v19  ;;  %v1191_v19 = vld [vmem:[%s2400_s8] sm:$0xff] }
 0x522   :  { %1258 = vmatpush.msrb.mxu1 %v1191_v19 }
 0x523   :  { %1229 = vmatpush.msrb.mxu0 %v1216_v2  ;;  %v1082_v2 = vperm.slane %v2231_v3, 2 }
 0x525   :  { %1230 = vmatpush.msrb.mxu0 %v1215_v40  ;;  %v1480_v40 = vld [vmem:[%s2398_s7] ss:$0 sm:$0xff] }
 0x527   :  { %1231 = vmatpush.msrb.mxu0 %v1214_v4  ;;  %v1161_v4 = vsel %vm1158_vm14, %v1160_v62, %v1156_v48 }
 0x528   :  { %v1186_v35 = vmul.f32 %v1480_v40, %v1161_v4 }
 0x529   :  { %1232 = vmatpush.msrb.mxu0 %v1213_v11  ;;  %v1176_v11 = vand.u32 2147483647, %v2280_v33 }
 0x52b   :  { %1233 = vmatpush.msrb.mxu0 %v1212_v24  ;;  %vm1177_vm3 = vcmp.eq.f32.partialorder %v1176_v11, 8.507059e+37 }
 0x52d   :  { %1234 = vmatpush.msrb.mxu0 %v1211_v6  ;;  %v1179_v6 = vor.u32 1.1754944e-38, %v1178_v47 }
 0x52f   :  { %1235 = vmatpush.msrb.mxu0 %v1210_v50  ;;  %v1180_v0 = vsel %vm1177_vm3, %v1179_v6, %v1175_v39 }
 0x530   :  { %v1189_v53 = vsub.f32 1.0, %v1180_v0 }
 0x531   :  { %1236 = vmatpush.msrb.mxu0 %v1209_v23 }
 0x533   :  { %1237 = vmatpush.msrb.mxu0 %v1208_v61 }
 0x535   :  { %1238 = vmatpush.msrb.mxu0 %v1207_v7 }
 0x585   :  { %v1003_v27 = vpop.f32.mrf.mxu0 }
 0x586   :  { %v1040_v45 = vadd.f32 %v1003_v27, %v168_v15  ;;  %v2307_v52 = vpop.f32.mrf.mxu1 }
 0x587   :  { %v1060_v51 = vadd.f32 %v2216_v43, %v2307_v52 }
 0x588   :  { %v1425_v5 = vmul.f32 -1.442695, %v1040_v45 }
 0x58a   :  { %1560 = vpow2.f32 %v1425_v5 }
 0x58b   :  { %v990_v37 = vpop.f32.mrf.mxu3 }
 0x58c   :  { %v1020_v49 = vadd.f32 %v990_v37, %v2411_v21  ;;  %v2414_v37 = vld [vmem:[#allocation8_spill] sm:$0xff] }
 0x58d   :  { %v1005_v12 = vpop.f32.mrf.mxu0  ;;  %v197_v21 = vadd.f32 %v2414_v37, %v1995_v42 }
 0x58e   :  { %v1424_v55 = vmul.f32 -1.442695, %v1020_v49  ;;  %v1018_v16 = vpop.f32.mrf.mxu1 }
 0x590   :  { %v1561_v41 = vpop.eup %1560  ;;  %1562 = vpow2.f32 %v1424_v55 }
 0x591   :  { %v2344_v54 = vadd.f32 1.0, %v1561_v41 }
 0x593   :  { %v992_v36 = vpop.f32.mrf.mxu3  ;;  %1564 = vrcp.f32 %v2344_v54  ;;  %v1056_v49 = vand.u32 2147483648, %v2344_v54  ;;  %vm1050_vm9 = vweird.f32 %v2344_v54  ;;  %v1054_v44 = vand.u32 2147483647, %v2344_v54 }
 0x595   :  { %v1057_v43 = vor.u32 1.1754944e-38, %v1056_v49  ;;  %vm1055_vm11 = vcmp.eq.f32.partialorder %v1054_v44, 8.507059e+37 }
 0x596   :  { %v1563_v17 = vpop.eup %1562 }
 0x597   :  { %v1024_v59 = vadd.f32 1.0, %v1563_v17 }
 0x599   :  { %1566 = vrcp.f32 %v1024_v59  ;;  %v1565_v14 = vpop.eup %1564  ;;  %v1036_v33 = vand.u32 2147483648, %v1024_v59  ;;  %v1034_v45 = vand.u32 2147483647, %v1024_v59  ;;  %vm1030_vm5 = vweird.f32 %v1024_v59 }
 0x59a   :  { %v1046_v3 = vmul.f32 %v1565_v14, %v2344_v54  ;;  %vm1051_vm8 = vweird.f32 %v1565_v14  ;;  %v1481_v54 = vld [vmem:[#allocation3] ss:$0 sm:$0xff] }
 0x59b   :  { %v1140_v20 = vpop.f32.mrf.mxu3  ;;  %v1037_v7 = vor.u32 1.1754944e-38, %v1036_v33  ;;  %vm1035_vm7 = vcmp.eq.f32.partialorder %v1034_v45, 8.507059e+37  ;;  %vm1052_vm10 = vmor %vm1050_vm9, %vm1051_vm8 }
 0x59c   :  { %v1141_v24 = vadd.f32 %v1140_v20, %v1082_v2  ;;  %v1047_v15 = vsub.f32 1.0, %v1046_v3 }
 0x59e   :  { %v1187_v50 = vadd.f32 %v1186_v35, %v1141_v24  ;;  %v1048_v61 = vmul.f32 %v1565_v14, %v1047_v15 }
 0x59f   :  { %v1567_v60 = vpop.eup %1566 }
 0x5a0   :  { %v1026_v9 = vmul.f32 %v1567_v60, %v1024_v59  ;;  %1568 = vtanh.f32 %v1187_v50  ;;  %vm1031_vm4 = vweird.f32 %v1567_v60  ;;  %v1049_v29 = vadd.f32 %v1565_v14, %v1048_v61 }
 0x5a1   :  { %vm1032_vm6 = vmor %vm1030_vm5, %vm1031_vm4 }
 0x5a2   :  { %v1027_v23 = vsub.f32 1.0, %v1026_v9  ;;  %v1053_v55 = vsel %vm1052_vm10, %v1565_v14, %v1049_v29 }
 0x5a3   :  { %v1142_v27 = vpop.f32.mrf.mxu3  ;;  %v1058_v52 = vsel %vm1055_vm11, %v1057_v43, %v1053_v55 }
 0x5a4   :  { %v1028_v34 = vmul.f32 %v1567_v60, %v1027_v23  ;;  %v1064_v16 = vsub.f32 1.0, %v1058_v52  ;;  %v1066_v41 = vmul.f32 %v1058_v52, %v2222_v56 }
 0x5a6   :  { %v1569_v63 = vpop.eup %1568  ;;  %v1029_v5 = vadd.f32 %v1567_v60, %v1028_v34 }
 0x5a7   :  { %v1190_v13 = vmul.f32 %v1569_v63, %v1189_v53 }
 0x5a8   :  { %v1033_v18 = vsel %vm1032_vm6, %v1567_v60, %v1029_v5 }
 0x5a9   :  { %v1038_v25 = vsel %vm1035_vm7, %v1037_v7, %v1033_v18  ;;  %1239 = vmatmul.f32.vlgmr.msrb.gmra.mxu0 %v1190_v13 }
 0x5aa   :  { %v1061_v32 = vmul.f32 %v1060_v51, %v1038_v25 }
 0x5ac   :  { %v1062_v12 = vadd.f32 %v1061_v32, %v197_v21 }
 0x5ae   :  { %1570 = vtanh.f32 %v1062_v12 }
 0x5b4   :  { %v1571_v28 = vpop.eup %1570 }
 0x5b5   :  { %v1065_v22 = vmul.f32 %v1571_v28, %v1064_v16 }
 0x5b7   :  { %v1067_v42 = vadd.f32 %v1066_v41, %v1065_v22 }
 0x5b9   :  { %1259 = vmatmul.f32.vlgmr.msrb.gmra.mxu1 %v1067_v42 }
 0x626   :  { %v1240_v38 = vpop.f32.mrf.mxu0 }
 0x636   :  { %v1260_v30 = vpop.f32.mrf.mxu1 }
 0x637   :  { %v1261_v57 = vadd.f32 %v1260_v30, %v1240_v38 }
 0x639   :  { %v1267_v10 = vadd.f32 %v1481_v54, %v1261_v57 }
 0x63b   :  { %1269 = vst.msk [vmem:[%s2402_s10] sm:$0xff] %vm1268_vm0, %v1267_v10 }

</bundles_post_ra>
